<compile_context>
chip_gen: v6e
topology: v6e:2x2x1
jax: 0.10.0
libtpu: 0.0.40
codegen_flags: <defaults>
</compile_context>

<pallas_src>
import jax
import jax.numpy as jnp
from jax.experimental import pallas as pl
from jax.experimental.pallas import tpu as pltpu


# ----------------------------- Pallas kernels ------------------------------ #

def conv_relu_pool_kernel(p_ref, w_ref, b_ref, o_ref):
    """Fused conv (im2col matmul) + bias + ReLU + 2x2 maxpool, channel-major.

    p_ref: (Bt, 4, K, P) bf16  im2col patches; axis 1 = the four 2x2 pool phases,
                               K = Cin*3*3 (ci, dy, dx), P = pooled_H * pooled_W
    w_ref: (Cout, K)     bf16  conv weight (torch weight.reshape(Cout, -1))
    b_ref: (Cout, 1)     f32   conv bias (broadcast along lanes)
    o_ref: (Bt, Cout, P) f32   pooled activations, channel-major (lane dim = P)
    """
    bt = p_ref.shape[0]
    w = w_ref[...]            # load once per block (stationary MXU operand)
    b = b_ref[...]            # load once (no per-phase broadcast_in_dim)
    for i in range(bt):       # static unroll over the images in this batch tile
        # (Cout, K) @ (K, P) -> (Cout, P): result is already NCHW / channel-major.
        z0 = jnp.dot(w, p_ref[i, 0], preferred_element_type=jnp.float32)
        z1 = jnp.dot(w, p_ref[i, 1], preferred_element_type=jnp.float32)
        z2 = jnp.dot(w, p_ref[i, 2], preferred_element_type=jnp.float32)
        z3 = jnp.dot(w, p_ref[i, 3], preferred_element_type=jnp.float32)
        # 2x2 max-pool over the 4 phases on raw matmul outputs; bias + ReLU are
        # hoisted after the max (bias is per-channel constant, ReLU is monotone).
        zmax = jnp.maximum(jnp.maximum(z0, z1), jnp.maximum(z2, z3))
        o_ref[i] = jnp.maximum(zmax + b, 0.0).astype(o_ref.dtype)


def conv_relu_pool(patches, w_cm, b_col, btile):
    B, _, K, P = patches.shape
    C = w_cm.shape[0]
    assert B % btile == 0
    return pl.pallas_call(
        conv_relu_pool_kernel,
        out_shape=jax.ShapeDtypeStruct((B, C, P), jnp.float32),
        grid=(B // btile,),
        in_specs=[
            pl.BlockSpec((btile, 4, K, P), lambda b: (b, 0, 0, 0)),
            pl.BlockSpec((C, K), lambda b: (0, 0)),
            pl.BlockSpec((C, 1), lambda b: (0, 0)),
        ],
        out_specs=pl.BlockSpec((btile, C, P), lambda b: (b, 0, 0)),
        compiler_params=pltpu.CompilerParams(dimension_semantics=("parallel",)),
    )(patches, w_cm, b_col)


def linear_kernel(x_ref, w_ref, b_ref, o_ref):
    """o = x @ w + b  (x: (B, F), w: (F, Npad), b: (1, Npad), o: (B, Npad))."""
    o_ref[...] = (
        jnp.dot(x_ref[...], w_ref[...], preferred_element_type=jnp.float32)
        + b_ref[...]
    ).astype(o_ref.dtype)


def linear(x, w, b):
    B, F = x.shape
    N = w.shape[1]
    return pl.pallas_call(
        linear_kernel,
        out_shape=jax.ShapeDtypeStruct((B, N), jnp.float32),
        grid=(1,),
        in_specs=[
            pl.BlockSpec((B, F), lambda i: (0, 0)),
            pl.BlockSpec((F, N), lambda i: (0, 0)),
            pl.BlockSpec((1, N), lambda i: (0, 0)),
        ],
        out_specs=pl.BlockSpec((B, N), lambda i: (0, 0)),
        compiler_params=pltpu.CompilerParams(dimension_semantics=("arbitrary",)),
    )(x, w, b)


# ------------------------------- JAX glue ---------------------------------- #

def im2col_pool_phases(x_nchw, k=3, pad=1, dtype=jnp.bfloat16):
    """(B, C, H, W) -> (B, 4, C*k*k, (H//2)*(W//2)) patches in (K, P) orientation.

    K order is (ci, dy, dx), matching torch weight.reshape(Cout, -1).  Axis 1
    enumerates the 2x2 max-pool phases (py, px); the P axis is the pooled output
    position (hh * (W//2) + ww), row-major.
    """
    B, C, H, W = x_nchw.shape
    xp = jnp.pad(x_nchw, ((0, 0), (0, 0), (pad, pad), (pad, pad)))
    cols = []
    for dy in range(k):
        for dx in range(k):
            cols.append(xp[:, :, dy:dy + H, dx:dx + W])       # (B, C, H, W)
    cols = jnp.stack(cols, axis=2)                            # (B, C, 9, H, W)
    cols = cols.reshape(B, C, k * k, H // 2, 2, W // 2, 2)    # (B,C,9,hh,py,ww,px)
    cols = cols.transpose(0, 4, 6, 1, 2, 3, 5)                # (B,py,px,C,9,hh,ww)
    return cols.reshape(B, 4, C * k * k, (H // 2) * (W // 2)).astype(dtype)


def _pick_btile(B, cap=8):
    """Largest divisor of B (<= cap) that keeps >= 2 grid steps (v7x 2-TC split)."""
    if B < 2:
        return max(B, 1)
    best = 1
    for t in range(1, min(B, cap) + 1):
        if B % t == 0 and (B // t) >= 2:
            best = t
    return best


LIN_NPAD = 128  # pad Linear N from 10 -> 128 for full-lane (unmasked) stores


def prepare_params(params):
    """One-time host-side weight prep: bf16 MXU operands, kernel-ready layouts."""
    F = 32 * 7 * 7
    wo_pad = jnp.zeros((F, LIN_NPAD), jnp.float32).at[:, :10].set(params["wo"].T)
    bo_pad = jnp.zeros((1, LIN_NPAD), jnp.float32).at[:, :10].set(
        params["bo"].reshape(1, 10))
    return {
        "w1": params["w1"].reshape(16, 9).astype(jnp.bfloat16),     # (Cout, K)
        "b1": params["b1"].reshape(16, 1).astype(jnp.float32),
        "w2": params["w2"].reshape(32, 144).astype(jnp.bfloat16),   # (Cout, K)
        "b2": params["b2"].reshape(32, 1).astype(jnp.float32),
        "wo": wo_pad,
        "bo": bo_pad,
    }


def cnn2_forward(x, kparams, btile=None):
    """x: (B, 1, 28, 28) NCHW float32 -> (logits (B, 10), features (B, 1568))."""
    B = x.shape[0]
    if btile is None:
        btile = _pick_btile(B)
    # conv1 + ReLU + 2x2 maxpool : 1x28x28 -> 16x14x14 (channel-major output)
    p1 = im2col_pool_phases(x)                                  # (B, 4, 9, 196) bf16
    h1 = conv_relu_pool(p1, kparams["w1"], kparams["b1"], btile)  # (B, 16, 196) f32
    h1_nchw = h1.reshape(B, 16, 14, 14)                         # free reshape (NCHW)
    # conv2 + ReLU + 2x2 maxpool : 16x14x14 -> 32x7x7 (channel-major output)
    p2 = im2col_pool_phases(h1_nchw)                            # (B, 4, 144, 49) bf16
    h2 = conv_relu_pool(p2, kparams["w2"], kparams["b2"], btile)  # (B, 32, 49) f32
    # flatten: (B, 32, 49) is already PyTorch (B, 32, 7, 7).view(B, -1) order -> free
    flat = h2.reshape(B, 32 * 7 * 7)
    # final Linear (N padded to 128 in the kernel; slice the real 10 logits)
    out = linear(flat, kparams["wo"], kparams["bo"])[:, :10]
    return out, flat


# --------------------------- pure-JAX reference ----------------------------- #

def cnn2_reference(x, params):
    def conv_block(h, w, b):
        y = jax.lax.conv_general_dilated(
            h, w, window_strides=(1, 1), padding=((1, 1), (1, 1)),
            dimension_numbers=("NCHW", "OIHW", "NCHW"))
        y = jax.nn.relu(y + b.reshape(1, -1, 1, 1))
        return jax.lax.reduce_window(y, -jnp.inf, jax.lax.max,
                                     (1, 1, 2, 2), (1, 1, 2, 2), "VALID")
    h = conv_block(x, params["w1"], params["b1"])
    h = conv_block(h, params["w2"], params["b2"])
    flat = h.reshape(h.shape[0], -1)
    return flat @ params["wo"].T + params["bo"], flat


# ---------------------------------- main ------------------------------------ #

if __name__ == "__main__":
    key = jax.random.PRNGKey(0)
    kx, k1, k2, k3, k4, k5, k6 = jax.random.split(key, 7)
    # 28x28 spatial is forced by the Linear(32*7*7, 10) layer; keep batch small.
    x = jax.random.normal(kx, (2, 1, 28, 28), jnp.float32)
    params = {
        "w1": 0.10 * jax.random.normal(k1, (16, 1, 3, 3), jnp.float32),
        "b1": 0.10 * jax.random.normal(k2, (16,), jnp.float32),
        "w2": 0.05 * jax.random.normal(k3, (32, 16, 3, 3), jnp.float32),
        "b2": 0.10 * jax.random.normal(k4, (32,), jnp.float32),
        "wo": 0.02 * jax.random.normal(k5, (10, 32 * 7 * 7), jnp.float32),
        "bo": 0.10 * jax.random.normal(k6, (10,), jnp.float32),
    }

    kparams = prepare_params(params)
    fwd = jax.jit(cnn2_forward)            # fuse the im2col glue around the kernels
    out, flat = fwd(x, kparams)
    (out, flat) = jax.block_until_ready((out, flat))

    ref_out, ref_flat = cnn2_reference(x, params)
    assert out.shape == (2, 10) and flat.shape == (2, 32 * 7 * 7)
    assert jnp.allclose(flat, ref_flat, rtol=1e-2, atol=1e-2)
    assert jnp.allclose(out, ref_out, rtol=1e-2, atol=1e-2)

    print("KERNEL_OK")
</pallas_src>

<mosaic_0001>
module attributes {stable_mosaic.version = 11 : i64} {
  func.func @conv_relu_pool_kernel(%arg0: i32, %arg1: memref<1x4x9x196xbf16, #tpu.memory_space<vmem>>, %arg2: memref<16x9xbf16, #tpu.memory_space<vmem>>, %arg3: memref<16x1xf32, #tpu.memory_space<vmem>>, %arg4: memref<1x16x196xf32, #tpu.memory_space<vmem>>) attributes {dimension_semantics = [#tpu.dimension_semantics<parallel>], iteration_bounds = array<i64: 2>, scalar_prefetch = 0 : i64, scratch_operands = 0 : i64, tpu.core_type = #tpu.core_type<tc>, window_params = [{transform_indices = @transform_0, window_bounds = array<i64: 1, 4, 9, 196>}, {pipeline_mode = #tpu.pipeline_mode<synchronous>, transform_indices = @transform_1, window_bounds = array<i64: 16, 9>}, {pipeline_mode = #tpu.pipeline_mode<synchronous>, transform_indices = @transform_2, window_bounds = array<i64: 16, 1>}, {transform_indices = @transform_3, window_bounds = array<i64: 1, 16, 196>}]} {
    %c0 = arith.constant 0 : index
    %c0_0 = arith.constant 0 : index
    %0 = vector.load %arg2[%c0, %c0_0] : memref<16x9xbf16, #tpu.memory_space<vmem>>, vector<16x9xbf16>
    %c0_1 = arith.constant 0 : index
    %c0_2 = arith.constant 0 : index
    %1 = vector.load %arg3[%c0_1, %c0_2] : memref<16x1xf32, #tpu.memory_space<vmem>>, vector<16x1xf32>
    %c0_3 = arith.constant 0 : index
    %c0_4 = arith.constant 0 : index
    %c0_5 = arith.constant 0 : index
    %c0_6 = arith.constant 0 : index
    %2 = vector.load %arg1[%c0_3, %c0_4, %c0_5, %c0_6] : memref<1x4x9x196xbf16, #tpu.memory_space<vmem>>, vector<1x1x9x196xbf16>
    %3 = vector.shape_cast %2 : vector<1x1x9x196xbf16> to vector<9x196xbf16>
    %cst = arith.constant dense<0.000000e+00> : vector<16x196xf32>
    %4 = tpu.matmul %0, %3, %cst {dimension_numbers = #tpu.dot_dimension_numbers<[1], [0], [0], [1], [0, 0, 1, 1], [], []>} : vector<16x9xbf16>, vector<9x196xbf16>, vector<16x196xf32> -> vector<16x196xf32>
    %c0_7 = arith.constant 0 : index
    %c1 = arith.constant 1 : index
    %c0_8 = arith.constant 0 : index
    %c0_9 = arith.constant 0 : index
    %5 = vector.load %arg1[%c0_7, %c1, %c0_8, %c0_9] : memref<1x4x9x196xbf16, #tpu.memory_space<vmem>>, vector<1x1x9x196xbf16>
    %6 = vector.shape_cast %5 : vector<1x1x9x196xbf16> to vector<9x196xbf16>
    %cst_10 = arith.constant dense<0.000000e+00> : vector<16x196xf32>
    %7 = tpu.matmul %0, %6, %cst_10 {dimension_numbers = #tpu.dot_dimension_numbers<[1], [0], [0], [1], [0, 0, 1, 1], [], []>} : vector<16x9xbf16>, vector<9x196xbf16>, vector<16x196xf32> -> vector<16x196xf32>
    %c0_11 = arith.constant 0 : index
    %c2 = arith.constant 2 : index
    %c0_12 = arith.constant 0 : index
    %c0_13 = arith.constant 0 : index
    %8 = vector.load %arg1[%c0_11, %c2, %c0_12, %c0_13] : memref<1x4x9x196xbf16, #tpu.memory_space<vmem>>, vector<1x1x9x196xbf16>
    %9 = vector.shape_cast %8 : vector<1x1x9x196xbf16> to vector<9x196xbf16>
    %cst_14 = arith.constant dense<0.000000e+00> : vector<16x196xf32>
    %10 = tpu.matmul %0, %9, %cst_14 {dimension_numbers = #tpu.dot_dimension_numbers<[1], [0], [0], [1], [0, 0, 1, 1], [], []>} : vector<16x9xbf16>, vector<9x196xbf16>, vector<16x196xf32> -> vector<16x196xf32>
    %c0_15 = arith.constant 0 : index
    %c3 = arith.constant 3 : index
    %c0_16 = arith.constant 0 : index
    %c0_17 = arith.constant 0 : index
    %11 = vector.load %arg1[%c0_15, %c3, %c0_16, %c0_17] : memref<1x4x9x196xbf16, #tpu.memory_space<vmem>>, vector<1x1x9x196xbf16>
    %12 = vector.shape_cast %11 : vector<1x1x9x196xbf16> to vector<9x196xbf16>
    %cst_18 = arith.constant dense<0.000000e+00> : vector<16x196xf32>
    %13 = tpu.matmul %0, %12, %cst_18 {dimension_numbers = #tpu.dot_dimension_numbers<[1], [0], [0], [1], [0, 0, 1, 1], [], []>} : vector<16x9xbf16>, vector<9x196xbf16>, vector<16x196xf32> -> vector<16x196xf32>
    %14 = arith.maximumf %4, %7 : vector<16x196xf32>
    %15 = arith.maximumf %10, %13 : vector<16x196xf32>
    %16 = arith.maximumf %14, %15 : vector<16x196xf32>
    %17 = vector.broadcast %1 : vector<16x1xf32> to vector<16x196xf32>
    %18 = arith.addf %16, %17 : vector<16x196xf32>
    %cst_19 = arith.constant 0.000000e+00 : f32
    %19 = vector.broadcast %cst_19 : f32 to vector<16x196xf32>
    %20 = arith.maximumf %18, %19 : vector<16x196xf32>
    %c0_20 = arith.constant 0 : index
    %c0_21 = arith.constant 0 : index
    %c0_22 = arith.constant 0 : index
    %21 = vector.load %arg4[%c0_20, %c0_21, %c0_22] : memref<1x16x196xf32, #tpu.memory_space<vmem>>, vector<1x16x196xf32>
    %22 = vector.shape_cast %21 : vector<1x16x196xf32> to vector<16x196xf32>
    %23 = vector.shape_cast %20 : vector<16x196xf32> to vector<1x16x196xf32>
    tpu.vector_store %arg4[%c0_20, %c0_21, %c0_22], %23 {strides = array<i32>} : memref<1x16x196xf32, #tpu.memory_space<vmem>>, vector<1x16x196xf32>,
    return
  }
  func.func @transform_0(%arg0: i32) -> (i32, i32, i32, i32) {
    %c0_i32 = arith.constant 0 : i32
    %c0_i32_0 = arith.constant 0 : i32
    %c0_i32_1 = arith.constant 0 : i32
    %c0_i32_2 = arith.constant 0 : i32
    return %arg0, %c0_i32, %c0_i32_0, %c0_i32_1 : i32, i32, i32, i32
  }
  func.func @transform_1(%arg0: i32) -> (i32, i32) {
    %c0_i32 = arith.constant 0 : i32
    %c0_i32_0 = arith.constant 0 : i32
    %c0_i32_1 = arith.constant 0 : i32
    return %c0_i32, %c0_i32_0 : i32, i32
  }
  func.func @transform_2(%arg0: i32) -> (i32, i32) {
    %c0_i32 = arith.constant 0 : i32
    %c0_i32_0 = arith.constant 0 : i32
    %c0_i32_1 = arith.constant 0 : i32
    return %c0_i32, %c0_i32_0 : i32, i32
  }
  func.func @transform_3(%arg0: i32) -> (i32, i32, i32) {
    %c0_i32 = arith.constant 0 : i32
    %c0_i32_0 = arith.constant 0 : i32
    %c0_i32_1 = arith.constant 0 : i32
    return %arg0, %c0_i32, %c0_i32_0 : i32, i32, i32
  }
}

module attributes {stable_mosaic.version = 11 : i64} {
  func.func @conv_relu_pool_kernel(%arg0: i32, %arg1: memref<1x4x144x49xbf16, #tpu.memory_space<vmem>>, %arg2: memref<32x144xbf16, #tpu.memory_space<vmem>>, %arg3: memref<32x1xf32, #tpu.memory_space<vmem>>, %arg4: memref<1x32x49xf32, #tpu.memory_space<vmem>>) attributes {dimension_semantics = [#tpu.dimension_semantics<parallel>], iteration_bounds = array<i64: 2>, scalar_prefetch = 0 : i64, scratch_operands = 0 : i64, tpu.core_type = #tpu.core_type<tc>, window_params = [{transform_indices = @transform_0, window_bounds = array<i64: 1, 4, 144, 49>}, {pipeline_mode = #tpu.pipeline_mode<synchronous>, transform_indices = @transform_1, window_bounds = array<i64: 32, 144>}, {pipeline_mode = #tpu.pipeline_mode<synchronous>, transform_indices = @transform_2, window_bounds = array<i64: 32, 1>}, {transform_indices = @transform_3, window_bounds = array<i64: 1, 32, 49>}]} {
    %c0 = arith.constant 0 : index
    %c0_0 = arith.constant 0 : index
    %0 = vector.load %arg2[%c0, %c0_0] : memref<32x144xbf16, #tpu.memory_space<vmem>>, vector<32x144xbf16>
    %c0_1 = arith.constant 0 : index
    %c0_2 = arith.constant 0 : index
    %1 = vector.load %arg3[%c0_1, %c0_2] : memref<32x1xf32, #tpu.memory_space<vmem>>, vector<32x1xf32>
    %c0_3 = arith.constant 0 : index
    %c0_4 = arith.constant 0 : index
    %c0_5 = arith.constant 0 : index
    %c0_6 = arith.constant 0 : index
    %2 = vector.load %arg1[%c0_3, %c0_4, %c0_5, %c0_6] : memref<1x4x144x49xbf16, #tpu.memory_space<vmem>>, vector<1x1x144x49xbf16>
    %3 = vector.shape_cast %2 : vector<1x1x144x49xbf16> to vector<144x49xbf16>
    %cst = arith.constant dense<0.000000e+00> : vector<32x49xf32>
    %4 = tpu.matmul %0, %3, %cst {dimension_numbers = #tpu.dot_dimension_numbers<[1], [0], [0], [1], [0, 0, 1, 1], [], []>} : vector<32x144xbf16>, vector<144x49xbf16>, vector<32x49xf32> -> vector<32x49xf32>
    %c0_7 = arith.constant 0 : index
    %c1 = arith.constant 1 : index
    %c0_8 = arith.constant 0 : index
    %c0_9 = arith.constant 0 : index
    %5 = vector.load %arg1[%c0_7, %c1, %c0_8, %c0_9] : memref<1x4x144x49xbf16, #tpu.memory_space<vmem>>, vector<1x1x144x49xbf16>
    %6 = vector.shape_cast %5 : vector<1x1x144x49xbf16> to vector<144x49xbf16>
    %cst_10 = arith.constant dense<0.000000e+00> : vector<32x49xf32>
    %7 = tpu.matmul %0, %6, %cst_10 {dimension_numbers = #tpu.dot_dimension_numbers<[1], [0], [0], [1], [0, 0, 1, 1], [], []>} : vector<32x144xbf16>, vector<144x49xbf16>, vector<32x49xf32> -> vector<32x49xf32>
    %c0_11 = arith.constant 0 : index
    %c2 = arith.constant 2 : index
    %c0_12 = arith.constant 0 : index
    %c0_13 = arith.constant 0 : index
    %8 = vector.load %arg1[%c0_11, %c2, %c0_12, %c0_13] : memref<1x4x144x49xbf16, #tpu.memory_space<vmem>>, vector<1x1x144x49xbf16>
    %9 = vector.shape_cast %8 : vector<1x1x144x49xbf16> to vector<144x49xbf16>
    %cst_14 = arith.constant dense<0.000000e+00> : vector<32x49xf32>
    %10 = tpu.matmul %0, %9, %cst_14 {dimension_numbers = #tpu.dot_dimension_numbers<[1], [0], [0], [1], [0, 0, 1, 1], [], []>} : vector<32x144xbf16>, vector<144x49xbf16>, vector<32x49xf32> -> vector<32x49xf32>
    %c0_15 = arith.constant 0 : index
    %c3 = arith.constant 3 : index
    %c0_16 = arith.constant 0 : index
    %c0_17 = arith.constant 0 : index
    %11 = vector.load %arg1[%c0_15, %c3, %c0_16, %c0_17] : memref<1x4x144x49xbf16, #tpu.memory_space<vmem>>, vector<1x1x144x49xbf16>
    %12 = vector.shape_cast %11 : vector<1x1x144x49xbf16> to vector<144x49xbf16>
    %cst_18 = arith.constant dense<0.000000e+00> : vector<32x49xf32>
    %13 = tpu.matmul %0, %12, %cst_18 {dimension_numbers = #tpu.dot_dimension_numbers<[1], [0], [0], [1], [0, 0, 1, 1], [], []>} : vector<32x144xbf16>, vector<144x49xbf16>, vector<32x49xf32> -> vector<32x49xf32>
    %14 = arith.maximumf %4, %7 : vector<32x49xf32>
    %15 = arith.maximumf %10, %13 : vector<32x49xf32>
    %16 = arith.maximumf %14, %15 : vector<32x49xf32>
    %17 = vector.broadcast %1 : vector<32x1xf32> to vector<32x49xf32>
    %18 = arith.addf %16, %17 : vector<32x49xf32>
    %cst_19 = arith.constant 0.000000e+00 : f32
    %19 = vector.broadcast %cst_19 : f32 to vector<32x49xf32>
    %20 = arith.maximumf %18, %19 : vector<32x49xf32>
    %c0_20 = arith.constant 0 : index
    %c0_21 = arith.constant 0 : index
    %c0_22 = arith.constant 0 : index
    %21 = vector.load %arg4[%c0_20, %c0_21, %c0_22] : memref<1x32x49xf32, #tpu.memory_space<vmem>>, vector<1x32x49xf32>
    %22 = vector.shape_cast %21 : vector<1x32x49xf32> to vector<32x49xf32>
    %23 = vector.shape_cast %20 : vector<32x49xf32> to vector<1x32x49xf32>
    tpu.vector_store %arg4[%c0_20, %c0_21, %c0_22], %23 {strides = array<i32>} : memref<1x32x49xf32, #tpu.memory_space<vmem>>, vector<1x32x49xf32>,
    return
  }
  func.func @transform_0(%arg0: i32) -> (i32, i32, i32, i32) {
    %c0_i32 = arith.constant 0 : i32
    %c0_i32_0 = arith.constant 0 : i32
    %c0_i32_1 = arith.constant 0 : i32
    %c0_i32_2 = arith.constant 0 : i32
    return %arg0, %c0_i32, %c0_i32_0, %c0_i32_1 : i32, i32, i32, i32
  }
  func.func @transform_1(%arg0: i32) -> (i32, i32) {
    %c0_i32 = arith.constant 0 : i32
    %c0_i32_0 = arith.constant 0 : i32
    %c0_i32_1 = arith.constant 0 : i32
    return %c0_i32, %c0_i32_0 : i32, i32
  }
  func.func @transform_2(%arg0: i32) -> (i32, i32) {
    %c0_i32 = arith.constant 0 : i32
    %c0_i32_0 = arith.constant 0 : i32
    %c0_i32_1 = arith.constant 0 : i32
    return %c0_i32, %c0_i32_0 : i32, i32
  }
  func.func @transform_3(%arg0: i32) -> (i32, i32, i32) {
    %c0_i32 = arith.constant 0 : i32
    %c0_i32_0 = arith.constant 0 : i32
    %c0_i32_1 = arith.constant 0 : i32
    return %arg0, %c0_i32, %c0_i32_0 : i32, i32, i32
  }
}

module attributes {stable_mosaic.version = 11 : i64} {
  func.func @linear_kernel(%arg0: i32, %arg1: memref<2x1568xf32, #tpu.memory_space<vmem>>, %arg2: memref<1568x128xf32, #tpu.memory_space<vmem>>, %arg3: memref<1x128xf32, #tpu.memory_space<vmem>>, %arg4: memref<2x128xf32, #tpu.memory_space<vmem>>) attributes {dimension_semantics = [#tpu.dimension_semantics<arbitrary>], iteration_bounds = array<i64: 1>, scalar_prefetch = 0 : i64, scratch_operands = 0 : i64, tpu.core_type = #tpu.core_type<tc>, window_params = [{pipeline_mode = #tpu.pipeline_mode<synchronous>, transform_indices = @transform_0, window_bounds = array<i64: 2, 1568>}, {pipeline_mode = #tpu.pipeline_mode<synchronous>, transform_indices = @transform_1, window_bounds = array<i64: 1568, 128>}, {pipeline_mode = #tpu.pipeline_mode<synchronous>, transform_indices = @transform_2, window_bounds = array<i64: 1, 128>}, {pipeline_mode = #tpu.pipeline_mode<synchronous>, transform_indices = @transform_3, window_bounds = array<i64: 2, 128>}]} {
    %c0 = arith.constant 0 : index
    %c0_0 = arith.constant 0 : index
    %0 = vector.load %arg1[%c0, %c0_0] : memref<2x1568xf32, #tpu.memory_space<vmem>>, vector<2x1568xf32>
    %c0_1 = arith.constant 0 : index
    %c0_2 = arith.constant 0 : index
    %1 = vector.load %arg2[%c0_1, %c0_2] : memref<1568x128xf32, #tpu.memory_space<vmem>>, vector<1568x128xf32>
    %cst = arith.constant dense<0.000000e+00> : vector<2x128xf32>
    %2 = tpu.matmul %0, %1, %cst {dimension_numbers = #tpu.dot_dimension_numbers<[1], [0], [0], [1], [0, 0, 1, 1], [], []>} : vector<2x1568xf32>, vector<1568x128xf32>, vector<2x128xf32> -> vector<2x128xf32>
    %c0_3 = arith.constant 0 : index
    %c0_4 = arith.constant 0 : index
    %3 = vector.load %arg3[%c0_3, %c0_4] : memref<1x128xf32, #tpu.memory_space<vmem>>, vector<1x128xf32>
    %4 = vector.broadcast %3 : vector<1x128xf32> to vector<2x128xf32>
    %5 = arith.addf %2, %4 : vector<2x128xf32>
    %c0_5 = arith.constant 0 : index
    %c0_6 = arith.constant 0 : index
    %6 = vector.load %arg4[%c0_5, %c0_6] : memref<2x128xf32, #tpu.memory_space<vmem>>, vector<2x128xf32>
    tpu.vector_store %arg4[%c0_5, %c0_6], %5 {strides = array<i32>} : memref<2x128xf32, #tpu.memory_space<vmem>>, vector<2x128xf32>,
    return
  }
  func.func @transform_0(%arg0: i32) -> (i32, i32) {
    %c0_i32 = arith.constant 0 : i32
    %c0_i32_0 = arith.constant 0 : i32
    %c0_i32_1 = arith.constant 0 : i32
    return %c0_i32, %c0_i32_0 : i32, i32
  }
  func.func @transform_1(%arg0: i32) -> (i32, i32) {
    %c0_i32 = arith.constant 0 : i32
    %c0_i32_0 = arith.constant 0 : i32
    %c0_i32_1 = arith.constant 0 : i32
    return %c0_i32, %c0_i32_0 : i32, i32
  }
  func.func @transform_2(%arg0: i32) -> (i32, i32) {
    %c0_i32 = arith.constant 0 : i32
    %c0_i32_0 = arith.constant 0 : i32
    %c0_i32_1 = arith.constant 0 : i32
    return %c0_i32, %c0_i32_0 : i32, i32
  }
  func.func @transform_3(%arg0: i32) -> (i32, i32) {
    %c0_i32 = arith.constant 0 : i32
    %c0_i32_0 = arith.constant 0 : i32
    %c0_i32_1 = arith.constant 0 : i32
    return %c0_i32, %c0_i32_0 : i32, i32
  }
}

</mosaic_0001>

<bundles_post_ra>
// kernel: cnn2_forward.3
= control target key start
LH: loop header
LB: loop body
LE: loop exit
PB: predicated region body
PF: predicated region fallthrough
CT: control target
= control target key end

     0   :  { %s604_s12 = smov 0   ;;  %s634_s0 = inlined_call_operand.vmem [shape: bf16[2,4,9,196], index: 0, kind: input, shape index: {}]   ;;  %s635_s1 = inlined_call_operand.vmem [shape: bf16[16,9], index: 1, kind: input, shape index: {}]   ;;  %s636_s2 = inlined_call_operand.vmem [shape: f32[16,1], index: 2, kind: input, shape index: {}]   ;;  %s637_s3 = inlined_call_operand.vmem [shape: f32[2,16,196], index: 3, kind: output, shape index: {}]  }
   0x1 LB: > { %s518_s13 = sadd.s32 4294967295, %s580_s12   ;;  %p522_p0 = scmp.ge.s32.totalorder %s580_s12, 1  ;;  %s580_s12 = sphi %s604_s12, %s13_s12  }
   0x2   : > { %p137_p1 = scmp.lt.s32.totalorder %s580_s12, 3 }
   0x4   : > { %p138_p2 = pnand %p522_p0, %p137_p1 }
   0x5   : > { %p161_p3 = scmp.lt.s32.totalorder (!%p138_p2), %s518_s13, 1 }
   0x6   : > { %141 = sbr.rel (%p138_p2) target bundleno = 238 (0xee), region = 32 }
   0xb   : > { %vm195_vm0 = vcmask 1043456   ;;  %v582_v0 = vmov 0   ;;  %s639_s13 = smov (!%p161_p3, %s518_s13), 1  ;;  %vm196_vm1 = vcmask 1044480   ;;  %v583_v1 = vmov 65535   ;;  %v174_v3 = vld [vmem:[%s636_s2] sm:$0xff] }
   0xc   : > { %237 = vmatprep.mubr.bf16.mxu0 %v582_v0  ;;  %297 = vmatprep.mubr.bf16.mxu1 %v582_v0  ;;  %v197_v2 = vsel %vm195_vm0, 4294967295, %v583_v1  ;;  %s548_s16 = sshll.u32 %s639_s13, 6  ;;  %v175_v4 = vld [vmem:[%s636_s2 + $0x8] sm:$0xff]  ;;  %v567_v12 = vld [vmem:[%s635_s1] sm:$0xff]   ;;  %vm191_vm2 = vcmask 72704   ;;  %s549_s24 = sshll.u32 %s639_s13, 5 }
   0xd   : > { %560 = vset.pattern.permute.xlu0 %v582_v0  ;;  %s165_s21 = scalar_lea.vmem %s634_s0, %s548_s16  ;;  %v198_v5 = vsel %vm196_vm1, %v197_v2, 0  ;;  %s170_s27 = scalar_lea.vmem %s637_s3, %s549_s24  ;;  %vm459_vm3 = vcmask 556032  }
   0xe   : > { %442 = vperm.xlu0 %560, %v174_v3   ;;  %v561_v6 = vld [vmem:[%s165_s21 + $0x4] ss:$8 sps:$4 sm:$0x1f]   ;;  %v563_v7 = vld [vmem:[%s165_s21 + $0x14] ss:$8 sps:$4 sm:$0x1f]  }
   0xf   : > { %v203_v8 = vand.u32 %v561_v6, %v198_v5  ;;  %v565_v9 = vld [vmem:[%s165_s21] ss:$8 sps:$4 sm:$0x1f]   ;;  %v566_v10 = vld [vmem:[%s165_s21 + $0x10] ss:$8 sps:$4 sm:$0x1f]   ;;  %v263_v11 = vand.u32 %v563_v7, %v198_v5 }
  0x10   : > { %v568_v13 = vld [vmem:[%s165_s21 + $0x20] ss:$8 sps:$4 sm:$0x1f]   ;;  %v200_v14 = vand.u32 %v565_v9, %v198_v5  ;;  %v260_v15 = vand.u32 %v566_v10, %v198_v5  ;;  %v570_v16 = vld [vmem:[%s165_s21 + $0x24] ss:$8 sps:$4 sm:$0x1f]  }
  0x11   : > { %219 = vmatprep.subr.bf16.mxu0 %v203_v8  ;;  %279 = vmatprep.subr.bf16.mxu1 %v263_v11  ;;  %v571_v17 = vld [vmem:[%s165_s21 + $0x30] ss:$8 sps:$4 sm:$0x1f]   ;;  %v573_v18 = vld [vmem:[%s165_s21 + $0x34] ss:$8 sps:$4 sm:$0x1f]   ;;  %v323_v19 = vand.u32 %v570_v16, %v198_v5  ;;  %v320_v20 = vand.u32 %v568_v13, %v198_v5 }
  0x12   : > { %447 = vperm.xlu0 %560, %v175_v4   ;;  %220 = vmatpush1.bf16.msra.mxu0 %v200_v14  ;;  %v383_v21 = vand.u32 %v573_v18, %v198_v5  ;;  %v380_v22 = vand.u32 %v571_v17, %v198_v5 }
  0x13   : > { %280 = vmatpush1.bf16.msra.mxu1 %v260_v15  ;;  %339 = vmatprep.subr.bf16.mxu0 %v323_v19 }
  0x14   : > { %399 = vmatprep.subr.bf16.mxu1 %v383_v21 }
  0x15   : > { %530 = vmatmul.mubr.msk.bf16.vlgmr.msra.gmra.mxu0 %vm191_vm2, %v567_v12 }
  0x16   : > { %535 = vmatmul.mubr.msk.bf16.vlgmr.msra.gmra.mxu1 %vm191_vm2, %v567_v12  ;;  %340 = vmatpush1.bf16.msra.mxu0 %v320_v20 }
  0x17   : > { %400 = vmatpush1.bf16.msra.mxu1 %v380_v22  ;;  %357 = vmatprep.mubr.bf16.mxu0 %v582_v0 }
  0x18   : > { %417 = vmatprep.mubr.bf16.mxu1 %v582_v0 }
  0x1d   : > { %540 = vmatmul.mubr.msk.bf16.vlgmr.msra.gmra.mxu0 %vm191_vm2, %v567_v12 }
  0x1e   : > { %545 = vmatmul.mubr.msk.bf16.vlgmr.msra.gmra.mxu1 %vm191_vm2, %v567_v12 }
  0x89   : > { %v443_v35 = vpop.permute.xlu0 %442 }
  0x8d   : > { %v448_v54 = vpop.permute.xlu0 %447 }
  0xd5   : > { %v239_v23 = vpop.f32.mrf.mxu0 }
  0xd6   : > { %v299_v24 = vpop.f32.mrf.mxu1 }
  0xd7   : > { %v241_v25 = vpop.f32.mrf.mxu0  ;;  %v428_v33 = vmax.f32 %v239_v23, %v299_v24 }
  0xd8   : > { %v301_v26 = vpop.f32.mrf.mxu1 }
  0xd9   : > { %v243_v27 = vpop.f32.mrf.mxu0  ;;  %v429_v38 = vmax.f32 %v241_v25, %v301_v26 }
  0xda   : > { %v303_v28 = vpop.f32.mrf.mxu1 }
  0xdb   : > { %v245_v29 = vpop.f32.mrf.mxu0  ;;  %v430_v43 = vmax.f32 %v243_v27, %v303_v28 }
  0xdc   : > { %v305_v30 = vpop.f32.mrf.mxu1 }
  0xdd   : > { %v359_v31 = vpop.f32.mrf.mxu0  ;;  %v431_v47 = vmax.f32 %v245_v29, %v305_v30 }
  0xde   : > { %v419_v32 = vpop.f32.mrf.mxu1 }
  0xdf   : > { %v432_v34 = vmax.f32 %v359_v31, %v419_v32  ;;  %v361_v36 = vpop.f32.mrf.mxu0 }
  0xe0   : > { %v421_v37 = vpop.f32.mrf.mxu1 }
  0xe1   : > { %v436_v39 = vmax.f32 %v428_v33, %v432_v34  ;;  %v433_v40 = vmax.f32 %v361_v36, %v421_v37  ;;  %v363_v41 = vpop.f32.mrf.mxu0 }
  0xe2   : > { %v423_v42 = vpop.f32.mrf.mxu1 }
  0xe3   : > { %v437_v44 = vmax.f32 %v429_v38, %v433_v40  ;;  %v450_v45 = vadd.f32 %v443_v35, %v436_v39  ;;  %v434_v46 = vmax.f32 %v363_v41, %v423_v42  ;;  %v365_v48 = vpop.f32.mrf.mxu0 }
  0xe4   : > { %v425_v49 = vpop.f32.mrf.mxu1 }
  0xe5   : > { %v451_v50 = vadd.f32 %v443_v35, %v437_v44  ;;  %v454_v51 = vmax.f32 %v450_v45, 0.0  ;;  %v435_v52 = vmax.f32 %v365_v48, %v425_v49  ;;  %v438_v53 = vmax.f32 %v430_v43, %v434_v46 }
  0xe7   : > { %v455_v55 = vmax.f32 %v451_v50, 0.0  ;;  %458 = vst [vmem:[%s170_s27] sm:$0xff] %v454_v51  ;;  %v439_v56 = vmax.f32 %v431_v47, %v435_v52  ;;  %v452_v57 = vadd.f32 %v448_v54, %v438_v53 }
  0xe9   : > { %460 = vst.msk [vmem:[%s170_s27 + $0x8] sm:$0xff] %vm459_vm3, %v455_v55  ;;  %v453_v58 = vadd.f32 %v448_v54, %v439_v56  ;;  %v456_v59 = vmax.f32 %v452_v57, 0.0 }
  0xeb   : > { %v457_v60 = vmax.f32 %v453_v58, 0.0  ;;  %461 = vst [vmem:[%s170_s27 + $0x10] sm:$0xff] %v456_v59 }
  0xed   : > { %462 = vst.msk [vmem:[%s170_s27 + $0x18] sm:$0xff] %vm459_vm3, %v457_v60 }
  0xee PF: > { %s13_s12 = sadd.s32 1, %s580_s12  }
  0xef   : > { %p10_p4 = scmp.ge.s32.totalorder %s13_s12, 4  }
  0xf1   :  { %12 = sbr.rel (!%p10_p4) target bundleno = 1 (0x1), region = 65 }

// kernel: cnn2_forward.4
= control target key start
LH: loop header
LB: loop body
LE: loop exit
PB: predicated region body
PF: predicated region fallthrough
CT: control target
= control target key end

     0   :  { %s988_s12 = smov 0   ;;  %s1139_s0 = inlined_call_operand.vmem [shape: bf16[2,4,144,49], index: 0, kind: input, shape index: {}]   ;;  %s1140_s1 = inlined_call_operand.vmem [shape: bf16[32,144], index: 1, kind: input, shape index: {}]   ;;  %s1141_s2 = inlined_call_operand.vmem [shape: f32[32,1], index: 2, kind: input, shape index: {}]   ;;  %s1142_s3 = inlined_call_operand.vmem [shape: f32[2,32,49], index: 3, kind: output, shape index: {}]  }
   0x1 LB: > { %s792_s13 = sadd.s32 4294967295, %s965_s12   ;;  %p796_p0 = scmp.ge.s32.totalorder %s965_s12, 1  ;;  %s965_s12 = sphi %s988_s12, %s13_s12  }
   0x2   : > { %p137_p1 = scmp.lt.s32.totalorder %s965_s12, 3 }
   0x4   : > { %p138_p2 = pnand %p796_p0, %p137_p1 }
   0x5   : > { %p161_p3 = scmp.lt.s32.totalorder (!%p138_p2), %s792_s13, 1 }
   0x6   : > { %141 = sbr.rel (%p138_p2) target bundleno = 301 (0x12d), region = 32 }
   0xb   : > { %v999_v0 = vld [vmem:[%s1140_s1 + $0x4] ss:$8 sps:$4 sm:$0xff]   ;;  %v967_v1 = vmov 0   ;;  %vm270_vm0 = vcmask 130048   ;;  %s1144_s13 = smov (!%p161_p3, %s792_s13), 1  ;;  %v178_v3 = vld [vmem:[%s1141_s2 + $0x10] sm:$0xff] }
   0xc   : > { %277 = vmatprep.subr.bf16.mxu0 %v967_v1  ;;  %399 = vmatprep.subr.bf16.mxu1 %v967_v1  ;;  %v176_v2 = vld [vmem:[%s1141_s2] sm:$0xff]  ;;  %s905_s20 = smul.u32 288, %s1144_s13  ;;  %v177_v4 = vld [vmem:[%s1141_s2 + $0x8] sm:$0xff]  ;;  %v179_v5 = vld [vmem:[%s1141_s2 + $0x18] sm:$0xff]  ;;  %s904_s7 = sshll.u32 %s1144_s13, 5  ;;  %vm732_vm1 = vcmask 400384  }
   0xd   : > { %813 = vmatprep.mubr.msk.bf16.mxu0 %vm270_vm0, %v999_v0  ;;  %842 = vmatprep.mubr.msk.bf16.mxu1 %vm270_vm0, %v999_v0  ;;  %v1066_v24 = vld [vmem:[%s1140_s1] ss:$8 sps:$4 sm:$0xff]   ;;  %v1075_v27 = vld [vmem:[%s1140_s1 + $0x14] ss:$8 sps:$4 sm:$0xff]   ;;  %v952_v30 = vld [vmem:[%s1140_s1 + $0x10] ss:$8 sps:$4 sm:$0xff]   ;;  %s170_s10 = scalar_lea.vmem %s1142_s3, %s904_s7 }
   0xe   : > { %915 = vset.pattern.permute.xlu0 %v967_v1  ;;  %916 = vset.pattern.permute.xlu1 %v967_v1  ;;  %s1027_s27 = scalar_lea.vmem %s1139_s0, %s905_s20 }
   0xf   : > { %706 = vperm.xlu0 %915, %v176_v2   ;;  %716 = vperm.xlu1 %916, %v178_v3   ;;  %v917_v6 = vld [vmem:[%s1027_s27 + $0x38] sm:$0xff]   ;;  %v918_v7 = vld [vmem:[%s1027_s27 + $0x80] sm:$0xff]   ;;  %v919_v8 = vld [vmem:[%s1027_s27 + $0x30] sm:$0xff]  }
  0x10   : > { %278 = vmatpush1.bf16.msra.mxu0 %v917_v6  ;;  %400 = vmatpush1.bf16.msra.mxu1 %v918_v7  ;;  %v920_v9 = vld [vmem:[%s1027_s27 + $0x78] sm:$0xff]   ;;  %v921_v10 = vld [vmem:[%s1027_s27 + $0x28] sm:$0xff]   ;;  %v922_v11 = vld [vmem:[%s1027_s27 + $0x70] sm:$0xff]  }
  0x11   : > { %279 = vmatprep.subr.bf16.mxu0 %v967_v1  ;;  %401 = vmatprep.subr.bf16.mxu1 %v967_v1  ;;  %v923_v12 = vld [vmem:[%s1027_s27 + $0x20] sm:$0xff]   ;;  %v924_v13 = vld [vmem:[%s1027_s27 + $0x68] sm:$0xff]   ;;  %v925_v14 = vld [vmem:[%s1027_s27 + $0x18] sm:$0xff]  }
  0x12   : > { %v926_v15 = vld [vmem:[%s1027_s27 + $0x60] sm:$0xff]   ;;  %v927_v16 = vld [vmem:[%s1027_s27 + $0x10] sm:$0xff]   ;;  %v928_v17 = vld [vmem:[%s1027_s27 + $0x58] sm:$0xff]  }
  0x13   : > { %711 = vperm.xlu0 %915, %v177_v4   ;;  %721 = vperm.xlu1 %916, %v179_v5   ;;  %v929_v18 = vld [vmem:[%s1027_s27 + $0x8] sm:$0xff]   ;;  %v930_v19 = vld [vmem:[%s1027_s27 + $0x50] sm:$0xff]   ;;  %v931_v20 = vld [vmem:[%s1027_s27] sm:$0xff]  }
  0x14   : > { %280 = vmatpush1.bf16.msra.mxu0 %v919_v8  ;;  %402 = vmatpush1.bf16.msra.mxu1 %v920_v9  ;;  %v932_v21 = vld [vmem:[%s1027_s27 + $0x48] sm:$0xff]   ;;  %v933_v22 = vld [vmem:[%s1027_s27 + $0x40] sm:$0xff]   ;;  %v939_v26 = vld [vmem:[%s1027_s27 + $0x110] sm:$0xff]  }
  0x15   : > { %281 = vmatprep.subr.bf16.mxu0 %v967_v1  ;;  %403 = vmatprep.subr.bf16.mxu1 %v967_v1  ;;  %v934_v23 = vld [vmem:[%s1027_s27 + $0x88] sm:$0xff]   ;;  %v940_v28 = vld [vmem:[%s1027_s27 + $0xc0] sm:$0xff]   ;;  %v942_v31 = vld [vmem:[%s1027_s27 + $0xb8] sm:$0xff]  }
  0x16   : > { %v938_v25 = vld [vmem:[%s1027_s27 + $0xc8] sm:$0xff]   ;;  %v943_v32 = vld [vmem:[%s1027_s27 + $0x100] sm:$0xff]   ;;  %v944_v33 = vld [vmem:[%s1027_s27 + $0xb0] sm:$0xff]  }
  0x17   : > { %v941_v29 = vld [vmem:[%s1027_s27 + $0x108] sm:$0xff]   ;;  %v945_v34 = vld [vmem:[%s1027_s27 + $0xf8] sm:$0xff]   ;;  %v947_v36 = vld [vmem:[%s1027_s27 + $0xf0] sm:$0xff]  }
  0x18   : > { %282 = vmatpush1.bf16.msra.mxu0 %v921_v10  ;;  %404 = vmatpush1.bf16.msra.mxu1 %v922_v11  ;;  %v946_v35 = vld [vmem:[%s1027_s27 + $0xa8] sm:$0xff]   ;;  %v950_v37 = vld [vmem:[%s1027_s27 + $0xa0] sm:$0xff]   ;;  %v953_v39 = vld [vmem:[%s1027_s27 + $0x98] sm:$0xff]  }
  0x19   : > { %283 = vmatprep.subr.bf16.mxu0 %v967_v1  ;;  %405 = vmatprep.subr.bf16.mxu1 %v967_v1  ;;  %v951_v38 = vld [vmem:[%s1027_s27 + $0xe8] sm:$0xff]   ;;  %v954_v40 = vld [vmem:[%s1027_s27 + $0xe0] sm:$0xff]   ;;  %v955_v41 = vld [vmem:[%s1027_s27 + $0x90] sm:$0xff]  }
  0x1a   : > { %v956_v42 = vld [vmem:[%s1027_s27 + $0xd8] sm:$0xff]   ;;  %v957_v43 = vld [vmem:[%s1027_s27 + $0xd0] sm:$0xff]  }
  0x1b   : > { %v958_v44 = vld [vmem:[%s1027_s27 + $0x118] sm:$0xff]  }
  0x1c   : > { %284 = vmatpush1.bf16.msra.mxu0 %v923_v12  ;;  %406 = vmatpush1.bf16.msra.mxu1 %v924_v13 }
  0x1d   : > { %285 = vmatprep.subr.bf16.mxu0 %v967_v1  ;;  %407 = vmatprep.subr.bf16.mxu1 %v967_v1 }
  0x20   : > { %286 = vmatpush1.bf16.msra.mxu0 %v925_v14  ;;  %408 = vmatpush1.bf16.msra.mxu1 %v926_v15 }
  0x21   : > { %287 = vmatprep.subr.bf16.mxu0 %v967_v1  ;;  %409 = vmatprep.subr.bf16.mxu1 %v967_v1 }
  0x24   : > { %288 = vmatpush1.bf16.msra.mxu0 %v927_v16  ;;  %410 = vmatpush1.bf16.msra.mxu1 %v928_v17 }
  0x25   : > { %289 = vmatprep.subr.bf16.mxu0 %v967_v1  ;;  %411 = vmatprep.subr.bf16.mxu1 %v967_v1 }
  0x28   : > { %290 = vmatpush1.bf16.msra.mxu0 %v929_v18  ;;  %412 = vmatpush1.bf16.msra.mxu1 %v930_v19 }
  0x29   : > { %291 = vmatprep.subr.bf16.mxu0 %v967_v1  ;;  %413 = vmatprep.subr.bf16.mxu1 %v967_v1 }
  0x2c   : > { %292 = vmatpush1.bf16.msra.mxu0 %v931_v20  ;;  %414 = vmatpush1.bf16.msra.mxu1 %v932_v21 }
  0x2d   : > { %307 = vmatprep.subr.bf16.mxu0 %v967_v1  ;;  %429 = vmatprep.subr.bf16.mxu1 %v967_v1 }
  0x30   : > { %308 = vmatpush2.bf16.msra.mxu0 %v933_v22  ;;  %430 = vmatpush2.bf16.msra.mxu1 %v934_v23 }
  0x31   : > { %521 = vmatprep.subr.bf16.mxu0 %v967_v1  ;;  %643 = vmatprep.subr.bf16.mxu1 %v967_v1 }
  0x33   : > { %310 = vmatmul.mubr.bf16.vlgmr.msra.gmra.mxu0 %v1066_v24  ;;  %432 = vmatmul.mubr.bf16.vlgmr.msra.gmra.mxu1 %v1066_v24 }
  0x34   : > { %522 = vmatpush1.bf16.msra.mxu0 %v938_v25  ;;  %644 = vmatpush1.bf16.msra.mxu1 %v939_v26 }
  0x35   : > { %523 = vmatprep.subr.bf16.mxu0 %v967_v1  ;;  %645 = vmatprep.subr.bf16.mxu1 %v967_v1 }
  0x36   : > { %814 = vmatprep.mubr.msk.bf16.mxu0 %vm270_vm0, %v1075_v27  ;;  %843 = vmatprep.mubr.msk.bf16.mxu1 %vm270_vm0, %v1075_v27 }
  0x38   : > { %524 = vmatpush1.bf16.msra.mxu0 %v940_v28  ;;  %646 = vmatpush1.bf16.msra.mxu1 %v941_v29 }
  0x39   : > { %525 = vmatprep.subr.bf16.mxu0 %v967_v1  ;;  %647 = vmatprep.subr.bf16.mxu1 %v967_v1 }
  0x3b   : > { %318 = vmatmul.mubr.bf16.gmra.mxu0 %v952_v30  ;;  %440 = vmatmul.mubr.bf16.gmra.mxu1 %v952_v30 }
  0x3c   : > { %526 = vmatpush1.bf16.msra.mxu0 %v942_v31  ;;  %648 = vmatpush1.bf16.msra.mxu1 %v943_v32 }
  0x3d   : > { %527 = vmatprep.subr.bf16.mxu0 %v967_v1  ;;  %649 = vmatprep.subr.bf16.mxu1 %v967_v1 }
  0x3e   : > { %871 = vmatprep.mubr.msk.bf16.mxu0 %vm270_vm0, %v999_v0  ;;  %900 = vmatprep.mubr.msk.bf16.mxu1 %vm270_vm0, %v999_v0 }
  0x40   : > { %528 = vmatpush1.bf16.msra.mxu0 %v944_v33  ;;  %650 = vmatpush1.bf16.msra.mxu1 %v945_v34 }
  0x41   : > { %529 = vmatprep.subr.bf16.mxu0 %v967_v1  ;;  %651 = vmatprep.subr.bf16.mxu1 %v967_v1 }
  0x44   : > { %530 = vmatpush1.bf16.msra.mxu0 %v946_v35  ;;  %652 = vmatpush1.bf16.msra.mxu1 %v947_v36 }
  0x45   : > { %531 = vmatprep.subr.bf16.mxu0 %v967_v1  ;;  %653 = vmatprep.subr.bf16.mxu1 %v967_v1 }
  0x48   : > { %532 = vmatpush1.bf16.msra.mxu0 %v950_v37  ;;  %654 = vmatpush1.bf16.msra.mxu1 %v951_v38 }
  0x49   : > { %533 = vmatprep.subr.bf16.mxu0 %v967_v1  ;;  %655 = vmatprep.subr.bf16.mxu1 %v967_v1 }
  0x4c   : > { %534 = vmatpush1.bf16.msra.mxu0 %v953_v39  ;;  %656 = vmatpush1.bf16.msra.mxu1 %v954_v40 }
  0x4d   : > { %535 = vmatprep.subr.bf16.mxu0 %v967_v1  ;;  %657 = vmatprep.subr.bf16.mxu1 %v967_v1 }
  0x50   : > { %536 = vmatpush1.bf16.msra.mxu0 %v955_v41  ;;  %658 = vmatpush1.bf16.msra.mxu1 %v956_v42 }
  0x51   : > { %551 = vmatprep.subr.bf16.mxu0 %v967_v1  ;;  %673 = vmatprep.subr.bf16.mxu1 %v967_v1 }
  0x54   : > { %552 = vmatpush2.bf16.msra.mxu0 %v957_v43  ;;  %674 = vmatpush2.bf16.msra.mxu1 %v958_v44 }
  0x57   : > { %554 = vmatmul.mubr.bf16.vlgmr.msra.gmra.mxu0 %v1066_v24  ;;  %676 = vmatmul.mubr.bf16.vlgmr.msra.gmra.mxu1 %v1066_v24 }
  0x58   : > { %872 = vmatprep.mubr.msk.bf16.mxu0 %vm270_vm0, %v1075_v27  ;;  %901 = vmatprep.mubr.msk.bf16.mxu1 %vm270_vm0, %v1075_v27 }
  0x5f   : > { %562 = vmatmul.mubr.bf16.gmra.mxu0 %v952_v30  ;;  %684 = vmatmul.mubr.bf16.gmra.mxu1 %v952_v30 }
  0x8a   : > { %v707_v63 = vpop.permute.xlu0 %706  ;;  %v717_v21 = vpop.permute.xlu1 %716 }
  0x8e   : > { %v712_v12 = vpop.permute.xlu0 %711  ;;  %v722_v34 = vpop.permute.xlu1 %721 }
  0xf3   : > { %v311_v45 = vpop.f32.mrf.mxu0  ;;  %v433_v46 = vpop.f32.mrf.mxu1 }
  0xf4   : > { %v692_v0 = vmax.f32 %v311_v45, %v433_v46 }
  0xf5   : > { %v313_v47 = vpop.f32.mrf.mxu0  ;;  %v435_v48 = vpop.f32.mrf.mxu1 }
  0xf7   : > { %v314_v49 = vpop.f32.mrf.mxu0  ;;  %v436_v50 = vpop.f32.mrf.mxu1 }
  0xf8   : > { %v693_v7 = vmax.f32 %v314_v49, %v436_v50 }
  0xf9   : > { %v316_v51 = vpop.f32.mrf.mxu0  ;;  %v438_v52 = vpop.f32.mrf.mxu1 }
  0xfb   : > { %v319_v53 = vpop.f32.mrf.mxu0  ;;  %v441_v54 = vpop.f32.mrf.mxu1 }
  0xfc   : > { %v694_v17 = vmax.f32 %v319_v53, %v441_v54 }
  0xfd   : > { %v321_v55 = vpop.f32.mrf.mxu0  ;;  %v443_v56 = vpop.f32.mrf.mxu1 }
  0xff   : > { %v322_v57 = vpop.f32.mrf.mxu0  ;;  %v444_v58 = vpop.f32.mrf.mxu1 }
 0x100   : > { %v695_v27 = vmax.f32 %v322_v57, %v444_v58 }
 0x101   : > { %v324_v59 = vpop.f32.mrf.mxu0  ;;  %v446_v60 = vpop.f32.mrf.mxu1 }
 0x117   : > { %v555_v61 = vpop.f32.mrf.mxu0  ;;  %v677_v62 = vpop.f32.mrf.mxu1 }
 0x118   : > { %v696_v1 = vmax.f32 %v555_v61, %v677_v62 }
 0x119   : > { %v557_v2 = vpop.f32.mrf.mxu0  ;;  %v679_v3 = vpop.f32.mrf.mxu1 }
 0x11a   : > { %v700_v4 = vmax.f32 %v692_v0, %v696_v1 }
 0x11b   : > { %v558_v5 = vpop.f32.mrf.mxu0  ;;  %v680_v6 = vpop.f32.mrf.mxu1 }
 0x11c   : > { %v724_v8 = vadd.f32 %v707_v63, %v700_v4  ;;  %v697_v9 = vmax.f32 %v558_v5, %v680_v6 }
 0x11d   : > { %v560_v10 = vpop.f32.mrf.mxu0  ;;  %v682_v11 = vpop.f32.mrf.mxu1 }
 0x11e   : > { %v728_v13 = vmax.f32 %v724_v8, 0.0  ;;  %v701_v14 = vmax.f32 %v693_v7, %v697_v9 }
 0x11f   : > { %v563_v15 = vpop.f32.mrf.mxu0  ;;  %v685_v16 = vpop.f32.mrf.mxu1 }
 0x120   : > { %733 = vst.msk [vmem:[%s170_s10] sm:$0xff] %vm732_vm1, %v728_v13  ;;  %v725_v18 = vadd.f32 %v712_v12, %v701_v14  ;;  %v698_v19 = vmax.f32 %v563_v15, %v685_v16 }
 0x121   : > { %v565_v20 = vpop.f32.mrf.mxu0  ;;  %v687_v22 = vpop.f32.mrf.mxu1 }
 0x122   : > { %v729_v23 = vmax.f32 %v725_v18, 0.0  ;;  %v702_v24 = vmax.f32 %v694_v17, %v698_v19 }
 0x123   : > { %v566_v25 = vpop.f32.mrf.mxu0  ;;  %v688_v26 = vpop.f32.mrf.mxu1 }
 0x124   : > { %734 = vst.msk [vmem:[%s170_s10 + $0x8] sm:$0xff] %vm732_vm1, %v729_v23  ;;  %v726_v28 = vadd.f32 %v717_v21, %v702_v24  ;;  %v699_v29 = vmax.f32 %v566_v25, %v688_v26 }
 0x125   : > { %v568_v30 = vpop.f32.mrf.mxu0  ;;  %v690_v31 = vpop.f32.mrf.mxu1 }
 0x126   : > { %v730_v32 = vmax.f32 %v726_v28, 0.0  ;;  %v703_v33 = vmax.f32 %v695_v27, %v699_v29 }
 0x128   : > { %735 = vst.msk [vmem:[%s170_s10 + $0x10] sm:$0xff] %vm732_vm1, %v730_v32  ;;  %v727_v35 = vadd.f32 %v722_v34, %v703_v33 }
 0x12a   : > { %v731_v36 = vmax.f32 %v727_v35, 0.0 }
 0x12c   : > { %736 = vst.msk [vmem:[%s170_s10 + $0x18] sm:$0xff] %vm732_vm1, %v731_v36 }
 0x12d PF: > { %s13_s12 = sadd.s32 1, %s965_s12  }
 0x12e   : > { %p10_p4 = scmp.ge.s32.totalorder %s13_s12, 4  }
 0x130   :  { %12 = sbr.rel (!%p10_p4) target bundleno = 1 (0x1), region = 65 }

// kernel: cnn2_forward.5
= control target key start
LH: loop header
LB: loop body
LE: loop exit
PB: predicated region body
PF: predicated region fallthrough
CT: control target
= control target key end

     0   :  { %v1062_v30 = vmov 1983009808   ;;  %v230_v32 = vlaneseq  ;;  %s1700_s0 = inlined_call_operand.vmem [shape: f32[2,1568], index: 0, kind: input, shape index: {}]   ;;  %s1701_s1 = inlined_call_operand.vmem [shape: f32[1568,128], index: 1, kind: input, shape index: {}]   ;;  %s1702_s2 = inlined_call_operand.vmem [shape: f32[1,128], index: 2, kind: input, shape index: {}]   ;;  %s1703_s3 = inlined_call_operand.hbm [shape: f32[2,128], index: 3, kind: output, shape index: {}]  }
   0x1   :  { %v50_v0 = vld [vmem:[%s1701_s1 + $0xf8] sm:$0xff]  ;;  %v49_v4 = vld [vmem:[%s1701_s1 + $0xf0] sm:$0xff]  ;;  %v48_v8 = vld [vmem:[%s1701_s1 + $0xe8] sm:$0xff]  ;;  %v228_v31 = vunpack.c.l.s4 %v1062_v30 }
   0x2   :  { %v82_v1 = vld [vmem:[%s1701_s1 + $0x1f8] sm:$0xff]  ;;  %807 = vmatprep.subr.mxu0 %v50_v0  ;;  %v81_v5 = vld [vmem:[%s1701_s1 + $0x1f0] sm:$0xff]  ;;  %v80_v9 = vld [vmem:[%s1701_s1 + $0x1e8] sm:$0xff]  ;;  %v231_v42 = vshrl.u32 %v230_v32, 7 }
   0x3   :  { %v34_v2 = vld [vmem:[%s1701_s1 + $0x78] sm:$0xff]  ;;  %842 = vmatprep.subr.mxu1 %v82_v1  ;;  %v33_v6 = vld [vmem:[%s1701_s1 + $0x70] sm:$0xff]  ;;  %v32_v10 = vld [vmem:[%s1701_s1 + $0x68] sm:$0xff]  ;;  %v229_v41 = vunpack.c.0.s8 %v228_v31 }
   0x4   :  { %v66_v3 = vld [vmem:[%s1701_s1 + $0x178] sm:$0xff]  ;;  %808 = vmatpush3.msra.mxu0 %v34_v2  ;;  %v65_v7 = vld [vmem:[%s1701_s1 + $0x170] sm:$0xff]  ;;  %v64_v11 = vld [vmem:[%s1701_s1 + $0x168] sm:$0xff] }
   0x5   :  { %843 = vmatpush3.msra.mxu1 %v66_v3  ;;  %809 = vmatprep.subr.mxu0 %v49_v4  ;;  %v47_v12 = vld [vmem:[%s1701_s1 + $0xe0] sm:$0xff]  ;;  %v46_v16 = vld [vmem:[%s1701_s1 + $0xd8] sm:$0xff]  ;;  %v45_v20 = vld [vmem:[%s1701_s1 + $0xd0] sm:$0xff]  ;;  %v1224_v51 = vsub.s32 %v229_v41, %v231_v42 }
   0x6   :  { %844 = vmatprep.subr.mxu1 %v81_v5  ;;  %810 = vmatpush3.msra.mxu0 %v33_v6  ;;  %v79_v13 = vld [vmem:[%s1701_s1 + $0x1e0] sm:$0xff]  ;;  %v78_v17 = vld [vmem:[%s1701_s1 + $0x1d8] sm:$0xff]  ;;  %v77_v21 = vld [vmem:[%s1701_s1 + $0x1d0] sm:$0xff] }
   0x7   :  { %845 = vmatpush3.msra.mxu1 %v65_v7  ;;  %811 = vmatprep.subr.mxu0 %v48_v8  ;;  %v31_v14 = vld [vmem:[%s1701_s1 + $0x60] sm:$0xff]  ;;  %v30_v18 = vld [vmem:[%s1701_s1 + $0x58] sm:$0xff]  ;;  %v29_v22 = vld [vmem:[%s1701_s1 + $0x50] sm:$0xff] }
   0x8   :  { %846 = vmatprep.subr.mxu1 %v80_v9  ;;  %v63_v15 = vld [vmem:[%s1701_s1 + $0x160] sm:$0xff]  ;;  %812 = vmatpush3.msra.mxu0 %v32_v10  ;;  %v62_v19 = vld [vmem:[%s1701_s1 + $0x158] sm:$0xff]  ;;  %v61_v23 = vld [vmem:[%s1701_s1 + $0x150] sm:$0xff] }
   0x9   :  { %847 = vmatpush3.msra.mxu1 %v64_v11  ;;  %813 = vmatprep.subr.mxu0 %v47_v12  ;;  %v44_v24 = vld [vmem:[%s1701_s1 + $0xc8] sm:$0xff]  ;;  %v43_v28 = vld [vmem:[%s1701_s1 + $0xc0] sm:$0xff]  ;;  %v42_v35 = vld [vmem:[%s1701_s1 + $0xb8] sm:$0xff] }
   0xa   :  { %848 = vmatprep.subr.mxu1 %v79_v13  ;;  %814 = vmatpush3.msra.mxu0 %v31_v14  ;;  %v76_v25 = vld [vmem:[%s1701_s1 + $0x1c8] sm:$0xff]  ;;  %v75_v29 = vld [vmem:[%s1701_s1 + $0x1c0] sm:$0xff]  ;;  %v74_v36 = vld [vmem:[%s1701_s1 + $0x1b8] sm:$0xff] }
   0xb   :  { %849 = vmatpush3.msra.mxu1 %v63_v15  ;;  %815 = vmatprep.subr.mxu0 %v46_v16  ;;  %v28_v26 = vld [vmem:[%s1701_s1 + $0x48] sm:$0xff]  ;;  %v27_v33 = vld [vmem:[%s1701_s1 + $0x40] sm:$0xff]  ;;  %v26_v37 = vld [vmem:[%s1701_s1 + $0x38] sm:$0xff] }
   0xc   :  { %850 = vmatprep.subr.mxu1 %v78_v17  ;;  %816 = vmatpush3.msra.mxu0 %v30_v18  ;;  %v60_v27 = vld [vmem:[%s1701_s1 + $0x148] sm:$0xff]  ;;  %v59_v34 = vld [vmem:[%s1701_s1 + $0x140] sm:$0xff]  ;;  %v58_v38 = vld [vmem:[%s1701_s1 + $0x138] sm:$0xff] }
   0xd   :  { %851 = vmatpush3.msra.mxu1 %v62_v19  ;;  %817 = vmatprep.subr.mxu0 %v45_v20  ;;  %v41_v39 = vld [vmem:[%s1701_s1 + $0xb0] sm:$0xff]  ;;  %v40_v45 = vld [vmem:[%s1701_s1 + $0xa8] sm:$0xff]  ;;  %v39_v49 = vld [vmem:[%s1701_s1 + $0xa0] sm:$0xff] }
   0xe   :  { %852 = vmatprep.subr.mxu1 %v77_v21  ;;  %818 = vmatpush3.msra.mxu0 %v29_v22  ;;  %v73_v40 = vld [vmem:[%s1701_s1 + $0x1b0] sm:$0xff]  ;;  %v72_v46 = vld [vmem:[%s1701_s1 + $0x1a8] sm:$0xff]  ;;  %v71_v50 = vld [vmem:[%s1701_s1 + $0x1a0] sm:$0xff] }
   0xf   :  { %853 = vmatpush3.msra.mxu1 %v61_v23  ;;  %819 = vmatprep.subr.mxu0 %v44_v24  ;;  %v25_v43 = vld [vmem:[%s1701_s1 + $0x30] sm:$0xff]  ;;  %v24_v47 = vld [vmem:[%s1701_s1 + $0x28] sm:$0xff]  ;;  %v23_v52 = vld [vmem:[%s1701_s1 + $0x20] sm:$0xff] }
  0x10   :  { %854 = vmatprep.subr.mxu1 %v76_v25  ;;  %820 = vmatpush3.msra.mxu0 %v28_v26  ;;  %v57_v44 = vld [vmem:[%s1701_s1 + $0x130] sm:$0xff]  ;;  %v56_v48 = vld [vmem:[%s1701_s1 + $0x128] sm:$0xff]  ;;  %v55_v53 = vld [vmem:[%s1701_s1 + $0x120] sm:$0xff] }
  0x11   :  { %855 = vmatpush3.msra.mxu1 %v60_v27  ;;  %821 = vmatprep.subr.mxu0 %v43_v28  ;;  %v15_v54 = vld [vmem:[%s1700_s0] sm:$0xff]  ;;  %v38_v55 = vld [vmem:[%s1701_s1 + $0x98] sm:$0xff]  ;;  %v37_v60 = vld [vmem:[%s1701_s1 + $0x90] sm:$0xff] }
  0x12   :  { %856 = vmatprep.subr.mxu1 %v75_v29  ;;  %822 = vmatpush3.msra.mxu0 %v27_v33  ;;  %v70_v56 = vld [vmem:[%s1701_s1 + $0x198] sm:$0xff]  ;;  %v226_v57 = vcombine.high %v15_v54, %v15_v54  ;;  %v69_v61 = vld [vmem:[%s1701_s1 + $0x190] sm:$0xff]  ;;  %v233_v62 = vrot.slane %v15_v54, %v1224_v51  ;;  %v36_v1 = vld [vmem:[%s1701_s1 + $0x88] sm:$0xff] }
  0x13   :  { %857 = vmatpush3.msra.mxu1 %v59_v34  ;;  %823 = vmatprep.subr.mxu0 %v42_v35  ;;  %v22_v58 = vld [vmem:[%s1701_s1 + $0x18] sm:$0xff]  ;;  %v21_v63 = vld [vmem:[%s1701_s1 + $0x10] sm:$0xff]  ;;  %v68_v2 = vld [vmem:[%s1701_s1 + $0x188] sm:$0xff] }
  0x14   :  { %858 = vmatprep.subr.mxu1 %v74_v36  ;;  %824 = vmatpush3.msra.mxu0 %v26_v37  ;;  %v54_v59 = vld [vmem:[%s1701_s1 + $0x118] sm:$0xff]  ;;  %v53_v0 = vld [vmem:[%s1701_s1 + $0x110] sm:$0xff]  ;;  %v240_v3 = vrot.slane %v226_v57, %v1224_v51  ;;  %v20_v4 = vld [vmem:[%s1701_s1 + $0x8] sm:$0xff]  ;;  %v241_v8 = vcombine.high %v233_v62, %v233_v62 }
  0x15   :  { %859 = vmatpush3.msra.mxu1 %v58_v38  ;;  %825 = vmatprep.subr.mxu0 %v41_v39  ;;  %v52_v5 = vld [vmem:[%s1701_s1 + $0x108] sm:$0xff]  ;;  %v35_v6 = vld [vmem:[%s1701_s1 + $0x80] sm:$0xff]  ;;  %v114_v12 = vld [vmem:[%s1701_s1 + $0x2f8] sm:$0xff] }
  0x16   :  { %860 = vmatprep.subr.mxu1 %v73_v40  ;;  %826 = vmatpush3.msra.mxu0 %v25_v43  ;;  %v67_v7 = vld [vmem:[%s1701_s1 + $0x180] sm:$0xff]  ;;  %v242_v11 = vcombine.high %v240_v3, %v240_v3  ;;  %v146_v13 = vld [vmem:[%s1701_s1 + $0x3f8] sm:$0xff]  ;;  %v113_v16 = vld [vmem:[%s1701_s1 + $0x2f0] sm:$0xff] }
  0x17   :  { %861 = vmatpush3.msra.mxu1 %v57_v44  ;;  %827 = vmatprep.subr.mxu0 %v40_v45  ;;  %v19_v9 = vld [vmem:[%s1701_s1] sm:$0xff]  ;;  %v98_v14 = vld [vmem:[%s1701_s1 + $0x278] sm:$0xff]  ;;  %v145_v17 = vld [vmem:[%s1701_s1 + $0x3f0] sm:$0xff] }
  0x18   :  { %862 = vmatprep.subr.mxu1 %v72_v46  ;;  %828 = vmatpush3.msra.mxu0 %v24_v47  ;;  %v51_v10 = vld [vmem:[%s1701_s1 + $0x100] sm:$0xff]  ;;  %v130_v15 = vld [vmem:[%s1701_s1 + $0x378] sm:$0xff]  ;;  %v97_v18 = vld [vmem:[%s1701_s1 + $0x270] sm:$0xff] }
  0x19   :  { %863 = vmatpush3.msra.mxu1 %v56_v48  ;;  %829 = vmatprep.subr.mxu0 %v39_v49  ;;  %v129_v19 = vld [vmem:[%s1701_s1 + $0x370] sm:$0xff]  ;;  %v112_v20 = vld [vmem:[%s1701_s1 + $0x2e8] sm:$0xff]  ;;  %v111_v24 = vld [vmem:[%s1701_s1 + $0x2e0] sm:$0xff] }
  0x1a   :  { %864 = vmatprep.subr.mxu1 %v71_v50  ;;  %830 = vmatpush3.msra.mxu0 %v23_v52  ;;  %v144_v21 = vld [vmem:[%s1701_s1 + $0x3e8] sm:$0xff]  ;;  %v143_v25 = vld [vmem:[%s1701_s1 + $0x3e0] sm:$0xff]  ;;  %v110_v28 = vld [vmem:[%s1701_s1 + $0x2d8] sm:$0xff] }
  0x1b   :  { %865 = vmatpush3.msra.mxu1 %v55_v53  ;;  %831 = vmatprep.subr.mxu0 %v38_v55  ;;  %v96_v22 = vld [vmem:[%s1701_s1 + $0x268] sm:$0xff]  ;;  %v95_v26 = vld [vmem:[%s1701_s1 + $0x260] sm:$0xff]  ;;  %v142_v29 = vld [vmem:[%s1701_s1 + $0x3d8] sm:$0xff] }
  0x1c   :  { %866 = vmatprep.subr.mxu1 %v70_v56  ;;  %832 = vmatpush3.msra.mxu0 %v22_v58  ;;  %v128_v23 = vld [vmem:[%s1701_s1 + $0x368] sm:$0xff]  ;;  %v127_v27 = vld [vmem:[%s1701_s1 + $0x360] sm:$0xff]  ;;  %v94_v30 = vld [vmem:[%s1701_s1 + $0x258] sm:$0xff] }
  0x1d   :  { %867 = vmatpush3.msra.mxu1 %v54_v59  ;;  %833 = vmatprep.subr.mxu0 %v37_v60  ;;  %v126_v31 = vld [vmem:[%s1701_s1 + $0x358] sm:$0xff]  ;;  %v109_v32 = vld [vmem:[%s1701_s1 + $0x2d0] sm:$0xff]  ;;  %v108_v36 = vld [vmem:[%s1701_s1 + $0x2c8] sm:$0xff] }
  0x1e   :  { %868 = vmatprep.subr.mxu1 %v69_v61  ;;  %834 = vmatpush3.msra.mxu0 %v21_v63  ;;  %v141_v33 = vld [vmem:[%s1701_s1 + $0x3d0] sm:$0xff]  ;;  %v140_v37 = vld [vmem:[%s1701_s1 + $0x3c8] sm:$0xff]  ;;  %v107_v40 = vld [vmem:[%s1701_s1 + $0x2c0] sm:$0xff] }
  0x1f   :  { %869 = vmatpush3.msra.mxu1 %v53_v0  ;;  %835 = vmatprep.subr.mxu0 %v36_v1  ;;  %v93_v34 = vld [vmem:[%s1701_s1 + $0x250] sm:$0xff]  ;;  %v92_v38 = vld [vmem:[%s1701_s1 + $0x248] sm:$0xff]  ;;  %v139_v41 = vld [vmem:[%s1701_s1 + $0x3c0] sm:$0xff] }
  0x20   :  { %870 = vmatprep.subr.mxu1 %v68_v2  ;;  %836 = vmatpush3.msra.mxu0 %v20_v4  ;;  %v125_v35 = vld [vmem:[%s1701_s1 + $0x350] sm:$0xff]  ;;  %v124_v39 = vld [vmem:[%s1701_s1 + $0x348] sm:$0xff]  ;;  %v91_v42 = vld [vmem:[%s1701_s1 + $0x240] sm:$0xff] }
  0x21   :  { %871 = vmatpush3.msra.mxu1 %v52_v5  ;;  %837 = vmatprep.subr.mxu0 %v35_v6  ;;  %v123_v43 = vld [vmem:[%s1701_s1 + $0x340] sm:$0xff]  ;;  %v106_v44 = vld [vmem:[%s1701_s1 + $0x2b8] sm:$0xff]  ;;  %v105_v48 = vld [vmem:[%s1701_s1 + $0x2b0] sm:$0xff] }
  0x22   :  { %872 = vmatprep.subr.mxu1 %v67_v7  ;;  %838 = vmatpush3.msra.mxu0 %v19_v9  ;;  %v138_v45 = vld [vmem:[%s1701_s1 + $0x3b8] sm:$0xff]  ;;  %v137_v49 = vld [vmem:[%s1701_s1 + $0x3b0] sm:$0xff]  ;;  %v104_v53 = vld [vmem:[%s1701_s1 + $0x2a8] sm:$0xff] }
  0x23   :  { %363 = vmatprep.mubr.f32.mxu0 %v241_v8  ;;  %873 = vmatpush3.msra.mxu1 %v51_v10  ;;  %v90_v46 = vld [vmem:[%s1701_s1 + $0x238] sm:$0xff]  ;;  %v89_v50 = vld [vmem:[%s1701_s1 + $0x230] sm:$0xff]  ;;  %v136_v54 = vld [vmem:[%s1701_s1 + $0x3a8] sm:$0xff] }
  0x24   :  { %364 = vmatmul.mubr.f32.vlgmr.msra.gmra.mxu0 %v233_v62  ;;  %433 = vmatprep.mubr.f32.mxu1 %v242_v11  ;;  %v122_v47 = vld [vmem:[%s1701_s1 + $0x338] sm:$0xff]  ;;  %v121_v52 = vld [vmem:[%s1701_s1 + $0x330] sm:$0xff]  ;;  %v88_v55 = vld [vmem:[%s1701_s1 + $0x228] sm:$0xff] }
  0x25   :  { %877 = vmatprep.subr.mxu0 %v114_v12  ;;  %912 = vmatprep.subr.mxu1 %v146_v13  ;;  %v120_v56 = vld [vmem:[%s1701_s1 + $0x328] sm:$0xff]  ;;  %v103_v58 = vld [vmem:[%s1701_s1 + $0x2a0] sm:$0xff]  ;;  %v102_v62 = vld [vmem:[%s1701_s1 + $0x298] sm:$0xff] }
  0x26   :  { %434 = vmatmul.mubr.f32.vlgmr.msra.gmra.mxu1 %v240_v3  ;;  %878 = vmatpush3.msra.mxu0 %v98_v14  ;;  %v16_v57 = vld [vmem:[%s1700_s0 + $0x8] sm:$0xff]  ;;  %v135_v59 = vld [vmem:[%s1701_s1 + $0x3a0] sm:$0xff]  ;;  %v134_v63 = vld [vmem:[%s1701_s1 + $0x398] sm:$0xff] }
  0x27   :  { %913 = vmatpush3.msra.mxu1 %v130_v15  ;;  %879 = vmatprep.subr.mxu0 %v113_v16  ;;  %v87_v60 = vld [vmem:[%s1701_s1 + $0x220] sm:$0xff]  ;;  %v243_v0 = vcombine.high %v16_v57, %v16_v57  ;;  %v86_v1 = vld [vmem:[%s1701_s1 + $0x218] sm:$0xff]  ;;  %v101_v3 = vld [vmem:[%s1701_s1 + $0x290] sm:$0xff]  ;;  %v250_v5 = vrot.slane %v16_v57, %v1224_v51 }
  0x28   :  { %914 = vmatprep.subr.mxu1 %v145_v17  ;;  %880 = vmatpush3.msra.mxu0 %v97_v18  ;;  %v119_v61 = vld [vmem:[%s1701_s1 + $0x320] sm:$0xff]  ;;  %v118_v2 = vld [vmem:[%s1701_s1 + $0x318] sm:$0xff]  ;;  %v133_v4 = vld [vmem:[%s1701_s1 + $0x390] sm:$0xff] }
  0x29   :  { %915 = vmatpush3.msra.mxu1 %v129_v19  ;;  %881 = vmatprep.subr.mxu0 %v112_v20  ;;  %v85_v6 = vld [vmem:[%s1701_s1 + $0x210] sm:$0xff]  ;;  %v100_v8 = vld [vmem:[%s1701_s1 + $0x288] sm:$0xff]  ;;  %v257_v10 = vrot.slane %v243_v0, %v1224_v51  ;;  %v99_v13 = vld [vmem:[%s1701_s1 + $0x280] sm:$0xff]  ;;  %v258_v15 = vcombine.high %v250_v5, %v250_v5 }
  0x2a   :  { %916 = vmatprep.subr.mxu1 %v144_v21  ;;  %882 = vmatpush3.msra.mxu0 %v96_v22  ;;  %v117_v7 = vld [vmem:[%s1701_s1 + $0x310] sm:$0xff]  ;;  %v132_v9 = vld [vmem:[%s1701_s1 + $0x388] sm:$0xff]  ;;  %v131_v14 = vld [vmem:[%s1701_s1 + $0x380] sm:$0xff] }
  0x2b   :  { %917 = vmatpush3.msra.mxu1 %v128_v23  ;;  %883 = vmatprep.subr.mxu0 %v111_v24  ;;  %v84_v11 = vld [vmem:[%s1701_s1 + $0x208] sm:$0xff]  ;;  %v83_v16 = vld [vmem:[%s1701_s1 + $0x200] sm:$0xff]  ;;  %v259_v18 = vcombine.high %v257_v10, %v257_v10  ;;  %v178_v19 = vld [vmem:[%s1701_s1 + $0x4f8] sm:$0xff] }
  0x2c   :  { %918 = vmatprep.subr.mxu1 %v143_v25  ;;  %884 = vmatpush3.msra.mxu0 %v95_v26  ;;  %v116_v12 = vld [vmem:[%s1701_s1 + $0x308] sm:$0xff]  ;;  %v115_v17 = vld [vmem:[%s1701_s1 + $0x300] sm:$0xff]  ;;  %v210_v20 = vld [vmem:[%s1701_s1 + $0x5f8] sm:$0xff] }
  0x2d   :  { %919 = vmatpush3.msra.mxu1 %v127_v27  ;;  %885 = vmatprep.subr.mxu0 %v110_v28  ;;  %v162_v21 = vld [vmem:[%s1701_s1 + $0x478] sm:$0xff] }
  0x2e   :  { %920 = vmatprep.subr.mxu1 %v142_v29  ;;  %886 = vmatpush3.msra.mxu0 %v94_v30  ;;  %v194_v22 = vld [vmem:[%s1701_s1 + $0x578] sm:$0xff] }
  0x2f   :  { %921 = vmatpush3.msra.mxu1 %v126_v31  ;;  %887 = vmatprep.subr.mxu0 %v109_v32 }
  0x30   :  { %922 = vmatprep.subr.mxu1 %v141_v33  ;;  %888 = vmatpush3.msra.mxu0 %v93_v34 }
  0x31   :  { %923 = vmatpush3.msra.mxu1 %v125_v35  ;;  %889 = vmatprep.subr.mxu0 %v108_v36 }
  0x32   :  { %924 = vmatprep.subr.mxu1 %v140_v37  ;;  %890 = vmatpush3.msra.mxu0 %v92_v38 }
  0x33   :  { %925 = vmatpush3.msra.mxu1 %v124_v39  ;;  %891 = vmatprep.subr.mxu0 %v107_v40 }
  0x34   :  { %926 = vmatprep.subr.mxu1 %v139_v41  ;;  %892 = vmatpush3.msra.mxu0 %v91_v42 }
  0x35   :  { %927 = vmatpush3.msra.mxu1 %v123_v43  ;;  %893 = vmatprep.subr.mxu0 %v106_v44 }
  0x36   :  { %928 = vmatprep.subr.mxu1 %v138_v45  ;;  %894 = vmatpush3.msra.mxu0 %v90_v46 }
  0x37   :  { %929 = vmatpush3.msra.mxu1 %v122_v47  ;;  %895 = vmatprep.subr.mxu0 %v105_v48 }
  0x38   :  { %930 = vmatprep.subr.mxu1 %v137_v49  ;;  %896 = vmatpush3.msra.mxu0 %v89_v50 }
  0x39   :  { %931 = vmatpush3.msra.mxu1 %v121_v52  ;;  %897 = vmatprep.subr.mxu0 %v104_v53 }
  0x3a   :  { %932 = vmatprep.subr.mxu1 %v136_v54  ;;  %898 = vmatpush3.msra.mxu0 %v88_v55 }
  0x3b   :  { %933 = vmatpush3.msra.mxu1 %v120_v56  ;;  %899 = vmatprep.subr.mxu0 %v103_v58 }
  0x3c   :  { %934 = vmatprep.subr.mxu1 %v135_v59  ;;  %900 = vmatpush3.msra.mxu0 %v87_v60 }
  0x3d   :  { %935 = vmatpush3.msra.mxu1 %v119_v61  ;;  %901 = vmatprep.subr.mxu0 %v102_v62 }
  0x3e   :  { %936 = vmatprep.subr.mxu1 %v134_v63  ;;  %902 = vmatpush3.msra.mxu0 %v86_v1 }
  0x3f   :  { %937 = vmatpush3.msra.mxu1 %v118_v2  ;;  %903 = vmatprep.subr.mxu0 %v101_v3 }
  0x40   :  { %938 = vmatprep.subr.mxu1 %v133_v4  ;;  %904 = vmatpush3.msra.mxu0 %v85_v6 }
  0x41   :  { %939 = vmatpush3.msra.mxu1 %v117_v7  ;;  %905 = vmatprep.subr.mxu0 %v100_v8 }
  0x42   :  { %940 = vmatprep.subr.mxu1 %v132_v9  ;;  %906 = vmatpush3.msra.mxu0 %v84_v11 }
  0x43   :  { %941 = vmatpush3.msra.mxu1 %v116_v12  ;;  %907 = vmatprep.subr.mxu0 %v99_v13 }
  0x44   :  { %942 = vmatprep.subr.mxu1 %v131_v14  ;;  %908 = vmatpush3.msra.mxu0 %v83_v16 }
  0x45   :  { %503 = vmatprep.mubr.f32.mxu0 %v258_v15  ;;  %943 = vmatpush3.msra.mxu1 %v115_v17 }
  0x46   :  { %504 = vmatmul.mubr.f32.vlgmr.msra.gmra.mxu0 %v250_v5 }
  0x47   :  { %8 = vsyncpa [#allocation3], 0  ;;  %573 = vmatprep.mubr.f32.mxu1 %v259_v18  ;;  %947 = vmatprep.subr.mxu0 %v178_v19  ;;  %v177_v23 = vld [vmem:[%s1701_s1 + $0x4f0] sm:$0xff]  ;;  %v176_v27 = vld [vmem:[%s1701_s1 + $0x4e8] sm:$0xff]  ;;  %vm1064_vm0 = vmmov 0   ;;  %vm296_vm1 = vcmask 261120  }
  0x48   :  { %v209_v24 = vld [vmem:[%s1701_s1 + $0x5f0] sm:$0xff]  ;;  %982 = vmatprep.subr.mxu1 %v210_v20  ;;  %574 = vmatmul.mubr.f32.vlgmr.msra.gmra.mxu1 %v257_v10  ;;  %v208_v28 = vld [vmem:[%s1701_s1 + $0x5e8] sm:$0xff]  ;;  %v175_v31 = vld [vmem:[%s1701_s1 + $0x4e0] sm:$0xff] }
  0x49   :  { %v161_v25 = vld [vmem:[%s1701_s1 + $0x470] sm:$0xff]  ;;  %948 = vmatpush3.msra.mxu0 %v162_v21  ;;  %983 = vmatpush3.msra.mxu1 %v194_v22  ;;  %v160_v29 = vld [vmem:[%s1701_s1 + $0x468] sm:$0xff]  ;;  %v207_v32 = vld [vmem:[%s1701_s1 + $0x5e0] sm:$0xff] }
  0x4a   :  { %v193_v26 = vld [vmem:[%s1701_s1 + $0x570] sm:$0xff]  ;;  %949 = vmatprep.subr.mxu0 %v177_v23  ;;  %984 = vmatprep.subr.mxu1 %v209_v24  ;;  %v192_v30 = vld [vmem:[%s1701_s1 + $0x568] sm:$0xff]  ;;  %v159_v33 = vld [vmem:[%s1701_s1 + $0x460] sm:$0xff] }
  0x4b   :  { %950 = vmatpush3.msra.mxu0 %v161_v25  ;;  %985 = vmatpush3.msra.mxu1 %v193_v26  ;;  %v191_v34 = vld [vmem:[%s1701_s1 + $0x560] sm:$0xff]  ;;  %v174_v35 = vld [vmem:[%s1701_s1 + $0x4d8] sm:$0xff]  ;;  %v173_v39 = vld [vmem:[%s1701_s1 + $0x4d0] sm:$0xff]  ;;  %v1063_v26 = vmov 0.0  }
  0x4c   :  { %951 = vmatprep.subr.mxu0 %v176_v27  ;;  %986 = vmatprep.subr.mxu1 %v208_v28  ;;  %v206_v36 = vld [vmem:[%s1701_s1 + $0x5d8] sm:$0xff]  ;;  %v205_v40 = vld [vmem:[%s1701_s1 + $0x5d0] sm:$0xff]  ;;  %v172_v43 = vld [vmem:[%s1701_s1 + $0x4c8] sm:$0xff] }
  0x4d   :  { %952 = vmatpush3.msra.mxu0 %v160_v29  ;;  %987 = vmatpush3.msra.mxu1 %v192_v30  ;;  %v158_v37 = vld [vmem:[%s1701_s1 + $0x458] sm:$0xff]  ;;  %v157_v41 = vld [vmem:[%s1701_s1 + $0x450] sm:$0xff]  ;;  %v204_v44 = vld [vmem:[%s1701_s1 + $0x5c8] sm:$0xff] }
  0x4e   :  { %953 = vmatprep.subr.mxu0 %v175_v31  ;;  %988 = vmatprep.subr.mxu1 %v207_v32  ;;  %v190_v38 = vld [vmem:[%s1701_s1 + $0x558] sm:$0xff]  ;;  %v189_v42 = vld [vmem:[%s1701_s1 + $0x550] sm:$0xff]  ;;  %v156_v45 = vld [vmem:[%s1701_s1 + $0x448] sm:$0xff] }
  0x4f   :  { %954 = vmatpush3.msra.mxu0 %v159_v33  ;;  %989 = vmatpush3.msra.mxu1 %v191_v34  ;;  %v188_v46 = vld [vmem:[%s1701_s1 + $0x548] sm:$0xff]  ;;  %v171_v47 = vld [vmem:[%s1701_s1 + $0x4c0] sm:$0xff]  ;;  %v170_v52 = vld [vmem:[%s1701_s1 + $0x4b8] sm:$0xff] }
  0x50   :  { %955 = vmatprep.subr.mxu0 %v174_v35  ;;  %990 = vmatprep.subr.mxu1 %v206_v36  ;;  %v203_v48 = vld [vmem:[%s1701_s1 + $0x5c0] sm:$0xff]  ;;  %v202_v53 = vld [vmem:[%s1701_s1 + $0x5b8] sm:$0xff]  ;;  %v169_v56 = vld [vmem:[%s1701_s1 + $0x4b0] sm:$0xff] }
  0x51   :  { %956 = vmatpush3.msra.mxu0 %v158_v37  ;;  %991 = vmatpush3.msra.mxu1 %v190_v38  ;;  %v155_v49 = vld [vmem:[%s1701_s1 + $0x440] sm:$0xff]  ;;  %v154_v54 = vld [vmem:[%s1701_s1 + $0x438] sm:$0xff]  ;;  %v201_v57 = vld [vmem:[%s1701_s1 + $0x5b0] sm:$0xff] }
  0x52   :  { %957 = vmatprep.subr.mxu0 %v173_v39  ;;  %992 = vmatprep.subr.mxu1 %v205_v40  ;;  %v187_v50 = vld [vmem:[%s1701_s1 + $0x540] sm:$0xff]  ;;  %v186_v55 = vld [vmem:[%s1701_s1 + $0x538] sm:$0xff]  ;;  %v153_v58 = vld [vmem:[%s1701_s1 + $0x430] sm:$0xff] }
  0x53   :  { %958 = vmatpush3.msra.mxu0 %v157_v41  ;;  %993 = vmatpush3.msra.mxu1 %v189_v42  ;;  %v185_v59 = vld [vmem:[%s1701_s1 + $0x530] sm:$0xff]  ;;  %v168_v60 = vld [vmem:[%s1701_s1 + $0x4a8] sm:$0xff]  ;;  %v167_v1 = vld [vmem:[%s1701_s1 + $0x4a0] sm:$0xff] }
  0x54   :  { %959 = vmatprep.subr.mxu0 %v172_v43  ;;  %994 = vmatprep.subr.mxu1 %v204_v44  ;;  %v200_v61 = vld [vmem:[%s1701_s1 + $0x5a8] sm:$0xff]  ;;  %v17_v62 = vld [vmem:[%s1700_s0 + $0x10] sm:$0xff]  ;;  %v199_v2 = vld [vmem:[%s1701_s1 + $0x5a0] sm:$0xff] }
  0x55   :  { %960 = vmatpush3.msra.mxu0 %v156_v45  ;;  %995 = vmatpush3.msra.mxu1 %v188_v46  ;;  %v152_v63 = vld [vmem:[%s1701_s1 + $0x428] sm:$0xff]  ;;  %v151_v3 = vld [vmem:[%s1701_s1 + $0x420] sm:$0xff]  ;;  %v260_v5 = vcombine.high %v17_v62, %v17_v62  ;;  %v166_v6 = vld [vmem:[%s1701_s1 + $0x498] sm:$0xff]  ;;  %v267_v12 = vrot.slane %v17_v62, %v1224_v51 }
  0x56   :  { %961 = vmatprep.subr.mxu0 %v171_v47  ;;  %996 = vmatprep.subr.mxu1 %v203_v48  ;;  %v184_v0 = vld [vmem:[%s1701_s1 + $0x528] sm:$0xff]  ;;  %v183_v4 = vld [vmem:[%s1701_s1 + $0x520] sm:$0xff]  ;;  %v198_v7 = vld [vmem:[%s1701_s1 + $0x598] sm:$0xff] }
  0x57   :  { %962 = vmatpush3.msra.mxu0 %v155_v49  ;;  %997 = vmatpush3.msra.mxu1 %v187_v50  ;;  %v150_v8 = vld [vmem:[%s1701_s1 + $0x418] sm:$0xff]  ;;  %v165_v10 = vld [vmem:[%s1701_s1 + $0x490] sm:$0xff]  ;;  %v274_v15 = vrot.slane %v260_v5, %v1224_v51  ;;  %v164_v16 = vld [vmem:[%s1701_s1 + $0x488] sm:$0xff]  ;;  %v275_v21 = vcombine.high %v267_v12, %v267_v12 }
  0x58   :  { %963 = vmatprep.subr.mxu0 %v170_v52  ;;  %998 = vmatprep.subr.mxu1 %v202_v53  ;;  %v182_v9 = vld [vmem:[%s1701_s1 + $0x518] sm:$0xff]  ;;  %v197_v11 = vld [vmem:[%s1701_s1 + $0x590] sm:$0xff]  ;;  %v196_v17 = vld [vmem:[%s1701_s1 + $0x588] sm:$0xff] }
  0x59   :  { %964 = vmatpush3.msra.mxu0 %v154_v54  ;;  %999 = vmatpush3.msra.mxu1 %v186_v55  ;;  %v149_v13 = vld [vmem:[%s1701_s1 + $0x410] sm:$0xff]  ;;  %v148_v18 = vld [vmem:[%s1701_s1 + $0x408] sm:$0xff]  ;;  %v163_v19 = vld [vmem:[%s1701_s1 + $0x480] sm:$0xff]  ;;  %v276_v23 = vcombine.high %v274_v15, %v274_v15 }
  0x5a   :  { %965 = vmatprep.subr.mxu0 %v169_v56  ;;  %1000 = vmatprep.subr.mxu1 %v201_v57  ;;  %v181_v14 = vld [vmem:[%s1701_s1 + $0x510] sm:$0xff]  ;;  %v180_v51 = vld [vmem:[%s1701_s1 + $0x508] sm:$0xff]  ;;  %v195_v20 = vld [vmem:[%s1701_s1 + $0x580] sm:$0xff] }
  0x5b   :  { %966 = vmatpush3.msra.mxu0 %v153_v58  ;;  %1001 = vmatpush3.msra.mxu1 %v185_v59  ;;  %v147_v22 = vld [vmem:[%s1701_s1 + $0x400] sm:$0xff]  ;;  %v214_v25 = vld [vmem:[%s1701_s1 + $0x618] sm:$0xff]  ;;  %v213_v27 = vld [vmem:[%s1701_s1 + $0x610] sm:$0xff] }
  0x5c   :  { %967 = vmatprep.subr.mxu0 %v168_v60  ;;  %1002 = vmatprep.subr.mxu1 %v200_v61  ;;  %v179_v24 = vld [vmem:[%s1701_s1 + $0x500] sm:$0xff]  ;;  %v212_v28 = vld [vmem:[%s1701_s1 + $0x608] sm:$0xff]  ;;  %v805_v30 = vld.sshfl [vmem:[%s1700_s0 + $0x18] sm:$0x3 pattern:$0x76325410] }
  0x5d   :  { %968 = vmatpush3.msra.mxu0 %v152_v63  ;;  %1003 = vmatpush3.msra.mxu1 %v184_v0  ;;  %v211_v29 = vld [vmem:[%s1701_s1 + $0x600] sm:$0xff]  ;;  %s1065_s0 = smov [#allocation2]  }
  0x5e   :  { %969 = vmatprep.subr.mxu0 %v167_v1  ;;  %1004 = vmatprep.subr.mxu1 %v199_v2  ;;  %v804_v36 = vld [vmem:[%s1702_s2] ss:$0 sm:$0xff]  ;;  %s796_s1 = sshll.u32 %s1065_s0, 4  ;;  %s797_s1 = int_to_ptr.vmem [resolvable:$true] %s796_s1 }
  0x5f   :  { %970 = vmatpush3.msra.mxu0 %v151_v3  ;;  %1005 = vmatpush3.msra.mxu1 %v183_v4  ;;  %s1040_s2 = scalar_lea.vmem %s797_s1, 32  ;;  %p1045_p1 = scmp.lt.s32.totalorder %s797_s1, %s797_s1 }
  0x60   :  { %971 = vmatprep.subr.mxu0 %v166_v6  ;;  %1006 = vmatprep.subr.mxu1 %v198_v7  ;;  %p1041_p0 = scmp.ne.s32.totalorder %s797_s1, %s1040_s2  ;;  %p1046_p2 = scmp.lt.s32.totalorder %s1040_s2, %s1040_s2 }
  0x61   :  { %972 = vmatpush3.msra.mxu0 %v150_v8  ;;  %1007 = vmatpush3.msra.mxu1 %v182_v9 }
  0x62   :  { %973 = vmatprep.subr.mxu0 %v165_v10  ;;  %1008 = vmatprep.subr.mxu1 %v197_v11  ;;  %p1047_p3 = por %p1046_p2, %p1045_p1 }
  0x63   :  { %974 = vmatpush3.msra.mxu0 %v149_v13  ;;  %1009 = vmatpush3.msra.mxu1 %v181_v14 }
  0x64   :  { %975 = vmatprep.subr.mxu0 %v164_v16  ;;  %1010 = vmatprep.subr.mxu1 %v196_v17  ;;  %p1048_p4 = pnand %p1047_p3, %p1041_p0 }
  0x65   :  { %976 = vmatpush3.msra.mxu0 %v148_v18  ;;  %1011 = vmatpush3.msra.mxu1 %v180_v51 }
  0x66   :  { %977 = vmatprep.subr.mxu0 %v163_v19  ;;  %1012 = vmatprep.subr.mxu1 %v195_v20 }
  0x67   :  { %978 = vmatpush3.msra.mxu0 %v147_v22  ;;  %643 = vmatprep.mubr.f32.mxu0 %v275_v21 }
  0x68   :  { %1013 = vmatpush3.msra.mxu1 %v179_v24  ;;  %713 = vmatprep.mubr.f32.mxu1 %v276_v23 }
  0x69   :  { %644 = vmatmul.mubr.f32.vlgmr.msra.gmra.mxu0 %v267_v12  ;;  %714 = vmatmul.mubr.f32.vlgmr.msra.gmra.mxu1 %v274_v15 }
  0x6a   :  { %1022 = vmatprep.subr.mxu0 %v1063_v26  ;;  %1030 = vmatprep.mubr.msk.f32.mxu0 %vm1064_vm0, %v1063_v26 }
  0x6b   :  { %1023 = vmatpush3.msra.mxu0 %v214_v25 }
  0x6c   :  { %1024 = vmatprep.subr.mxu0 %v1063_v26 }
  0x6d   :  { %1025 = vmatpush3.msra.mxu0 %v213_v27 }
  0x6e   :  { %1026 = vmatprep.subr.mxu0 %v1063_v26 }
  0x6f   :  { %1027 = vmatpush3.msra.mxu0 %v212_v28 }
  0x70   :  { %1028 = vmatprep.subr.mxu0 %v1063_v26 }
  0x71   :  { %1029 = vmatpush3.msra.mxu0 %v211_v29 }
  0x72   :  { %1031 = vmatmul.mubr.msk.f32.vlgmr.msra.gmra.mxu0 %vm296_vm1, %v805_v30 }
  0xe4   :  { %v839_v31 = vpop.f32.mrf.mxu0 }
  0xe6   :  { %v874_v32 = vpop.f32.mrf.mxu1  ;;  %v840_v33 = vpop.f32.mrf.mxu0 }
  0xe7   :  { %v841_v35 = vadd.f32 %v840_v33, %v839_v31 }
  0xe8   :  { %v875_v37 = vpop.f32.mrf.mxu1 }
  0xe9   :  { %v366_v40 = vadd.f32 %v841_v35, %v804_v36  ;;  %v876_v41 = vadd.f32 %v875_v37, %v874_v32 }
  0xeb   :  { %v436_v44 = vadd.f32 %v876_v41, %v366_v40 }
 0x106   :  { %v909_v34 = vpop.f32.mrf.mxu0 }
 0x108   :  { %v944_v38 = vpop.f32.mrf.mxu1  ;;  %v910_v39 = vpop.f32.mrf.mxu0 }
 0x109   :  { %v911_v42 = vadd.f32 %v910_v39, %v909_v34 }
 0x10a   :  { %v945_v43 = vpop.f32.mrf.mxu1 }
 0x10b   :  { %v506_v45 = vadd.f32 %v911_v42, %v436_v44  ;;  %v946_v46 = vadd.f32 %v945_v43, %v944_v38 }
 0x10d   :  { %v576_v52 = vadd.f32 %v946_v46, %v506_v45 }
 0x129   :  { %v979_v47 = vpop.f32.mrf.mxu0  ;;  %v1014_v48 = vpop.f32.mrf.mxu1 }
 0x12b   :  { %v980_v49 = vpop.f32.mrf.mxu0  ;;  %v1015_v50 = vpop.f32.mrf.mxu1 }
 0x12c   :  { %v981_v53 = vadd.f32 %v980_v49, %v979_v47  ;;  %v1016_v55 = vadd.f32 %v1015_v50, %v1014_v48 }
 0x12e   :  { %v646_v54 = vadd.f32 %v981_v53, %v576_v52 }
 0x130   :  { %v716_v56 = vadd.f32 %v1016_v55, %v646_v54 }
 0x132   :  { %v785_v57 = vpop.f32.mrf.mxu0 }
 0x133   :  { %v786_v58 = vadd.f32 %v785_v57, %v716_v56 }
 0x134   :  { %v1032_v59 = vpop.f32.mrf.mxu0 }
 0x135   :  { %789 = vst [vmem:[#allocation2] sm:$0x3] %v786_v58 }
 0x136   :  { %1051 = shalt.err (!%p1048_p4)
}
 0x137   :  { %799 = dma.vmem_to_hbm [thread:$0]  %s797_s1, 32, %s1703_s3, [#allocation3]  }
 0x138   :  { %1060 = dma.done.wait [#allocation3], 32  }
 0x139   :  { %1061 = vsyncadd [#allocation3], 4294967264 }
 0x13a   :  { %803 = vsyncpa [#allocation3], 1 }

</bundles_post_ra>
